<compile_context>
chip_gen: v5e
topology: v5e:2x2
jax: 0.10.0
libtpu: 0.0.40
codegen_flags: <defaults>
</compile_context>

<pallas_src>
import numpy as np
import jax
import jax.numpy as jnp
from jax.experimental import pallas as pl
from jax.experimental.pallas import tpu as pltpu


def _hardsigmoid(v):
    # torch.nn.Hardsigmoid: relu6(x + 3) / 6
    return jnp.clip(v / 6.0 + 0.5, 0.0, 1.0)


def _cdiv(a, b):
    return -(-a // b)


# --------------------------------------------------------------------------------------
# generation-aware VMEM limits
# --------------------------------------------------------------------------------------
def _vmem_limits(limit=None, budget=None):
    if limit is None:
        try:
            cap = int(pltpu.get_tpu_info().vmem_capacity_bytes)
        except Exception:
            cap = 64 * 1024 * 1024          # conservative fallback (v7x per-TC VMEM)
        # leave headroom for Mosaic internal scratch / params / regalloc
        limit = min(int(cap * 0.85), cap - (2 << 20))
    if budget is None:
        budget = int(limit * 0.75)          # fused-dispatch gate
    return int(limit), int(budget)


# --------------------------------------------------------------------------------------
# parameter packing (cuts 13 tiny VMEM operands down to 5 + one SMEM scalar vector)
# --------------------------------------------------------------------------------------
def _pack_params(params):
    """Returns (scal, w3, b3, chq_w, cho_w, cvec):
         scal = [tanh(gamma), chq_b]              (2,)        f32, lives in SMEM
         w3   = stack(spv_w, spq_w, chv_w)        (3, C/2, C) f32
         b3   = stack(spv_b, spq_b, chv_b)        (3, C/2, 1) f32
         cvec = stack(cho_b, ln_w, ln_b)          (3, C, 1)   f32
    """
    f32 = jnp.float32
    scal = jnp.concatenate([jnp.tanh(params["gamma"][0]).astype(f32),
                            params["chq_b"][0].astype(f32)])                   # (2,)
    w3 = jnp.stack([params["spv_w"], params["spq_w"], params["chv_w"]]).astype(f32)
    b3 = jnp.stack([params["spv_b"], params["spq_b"], params["chv_b"]]).astype(f32)
    cvec = jnp.stack([params["cho_b"], params["ln_w"], params["ln_b"]]).astype(f32)
    return scal, w3, b3, params["chq_w"].astype(f32), params["cho_w"].astype(f32), cvec


# --------------------------------------------------------------------------------------
# fused single-pass kernel: one (C, HW) slab per grid step (used when it fits VMEM)
# --------------------------------------------------------------------------------------
def _psa_fused_kernel(x_ref, scal_ref, w3_ref, b3_ref, chqw_ref, chow_ref, cvec_ref, o_ref):
    f32 = jnp.float32
    x = x_ref[0]                                                   # (C, HW), input dtype

    # ---- SpatialSelfAttention query path (conv commutes with the spatial mean) --------
    xbar = jnp.mean(x, axis=1, keepdims=True, dtype=f32)           # (C, 1)
    pooled = jnp.dot(w3_ref[1], xbar, preferred_element_type=f32) + b3_ref[1]      # (C2,1)
    pooled = pooled - jnp.max(pooled, axis=0, keepdims=True)
    e = jnp.exp(pooled)
    q = e * pl.reciprocal(jnp.sum(e, axis=0, keepdims=True), approx=False)         # (C2,1)

    # fold the softmax weights into the value conv: att_sp = (q^T spv_w) x + q^T spv_b
    qw = jnp.sum(q * w3_ref[0], axis=0, keepdims=True)             # (1, C)
    qb = jnp.sum(q * b3_ref[0], axis=0, keepdims=True)             # (1, 1)

    # ---- single (2,C)x(C,HW) sweep: row0 -> spatial att, row1 -> channel query --------
    sw = jnp.concatenate([qw, chqw_ref[...]], axis=0).astype(x.dtype)               # (2,C)
    m2 = jnp.dot(sw, x, preferred_element_type=f32)                # (2, HW)
    w_sp = _hardsigmoid(m2[0:1, :] + qb)                           # spatial weight (1, HW)

    # ---- ChannelSelfAttention ---------------------------------------------------------
    s = w_sp * m2[1:2, :] + scal_ref[1]                            # (1, HW) softmax logits
    m = jnp.max(s, axis=1, keepdims=True)
    p = jnp.exp(s - m)
    inv_l = pl.reciprocal(jnp.sum(p, axis=1, keepdims=True), approx=False)
    # softmax-weighted mean of y = w_sp * x via one MXU contraction (no full f32 slab temp)
    wp = (w_sp * p).astype(x.dtype)                                # (1, HW)
    ybar = jax.lax.dot_general(x, wp, (((1,), (1,)), ((), ())),
                               preferred_element_type=f32) * inv_l                 # (C, 1)
    att_ch = jnp.dot(w3_ref[2], ybar, preferred_element_type=f32) + b3_ref[2]      # (C2,1)
    out_ch = jnp.dot(chow_ref[...], att_ch, preferred_element_type=f32) + cvec_ref[0]  # (C,1)

    # head: LayerNorm over channels -> Hardsigmoid
    mu = jnp.mean(out_ch, axis=0, keepdims=True)
    var = jnp.mean((out_ch - mu) ** 2, axis=0, keepdims=True)
    ln = (out_ch - mu) * jax.lax.rsqrt(var + 1e-5) * cvec_ref[1] + cvec_ref[2]
    cw = _hardsigmoid(ln)                                          # channel weight (C, 1)

    # ---- ResidualPSA: x + tanh(gamma) * cw * (w_sp * x) --------------------------------
    gcw = (scal_ref[0] * cw).astype(x.dtype)                       # (C, 1)
    w_spc = w_sp.astype(x.dtype)                                   # (1, HW)
    o_ref[0] = (x + gcw * (w_spc * x)).astype(o_ref.dtype)


def _psa_fused(x2, packed, *, vmem_limit, alias_input=False):
    scal, w3, b3, chq_w, cho_w, cvec = packed
    B, C, HW = x2.shape

    def const_spec(a):
        return pl.BlockSpec(a.shape, lambda b, _nd=a.ndim: (0,) * _nd)

    kwargs = {"input_output_aliases": {0: 0}} if alias_input else {}

    def build(single_buffer):
        bs_kw = {"pipeline_mode": pl.Buffered(1)} if single_buffer else {}
        return pl.pallas_call(
            _psa_fused_kernel,
            out_shape=jax.ShapeDtypeStruct((B, C, HW), x2.dtype),
            grid=(B,),
            in_specs=[
                pl.BlockSpec((1, C, HW), lambda b: (b, 0, 0), **bs_kw),
                pl.BlockSpec(memory_space=pltpu.MemorySpace.SMEM),     # [tanh(gamma), chq_b]
                const_spec(w3), const_spec(b3), const_spec(chq_w),
                const_spec(cho_w), const_spec(cvec),
            ],
            out_specs=pl.BlockSpec((1, C, HW), lambda b: (b, 0, 0), **bs_kw),
            compiler_params=pltpu.CompilerParams(
                dimension_semantics=("parallel",),
                vmem_limit_bytes=vmem_limit),
            **kwargs,
        )

    args = (x2, scal, w3, b3, chq_w, cho_w, cvec)
    if B == 1:
        # single-buffer the slab at a 1-step grid; fall back if unsupported
        try:
            return build(True)(*args)
        except Exception:
            pass
    return build(False)(*args)


# --------------------------------------------------------------------------------------
# HW-tiled path (large H*W): pass 1 reduces over HW tiles with an online softmax into
# per-(batch, segment) partial stats; the tiny channel-attention tail and segment merge
# run in XLA; pass 2 is a fully-parallel elementwise apply.  No pad / slice copies.
# --------------------------------------------------------------------------------------
def _make_stats_kernel(hw_valid, hw_tile, tiles_per_seg, need_mask):
    def kernel(x_ref, sw_ref, qb_ref, scal_ref, stats_ref, m_s, l_s, acc_s):
        f32 = jnp.float32
        s_idx = pl.program_id(1)
        t = pl.program_id(2)

        @pl.when(t == 0)
        def _():
            m_s[...] = jnp.full_like(m_s, -jnp.inf)
            l_s[...] = jnp.zeros_like(l_s)
            acc_s[...] = jnp.zeros_like(acc_s)

        x = x_ref[0]                                               # (C, T), input dtype
        if need_mask:
            # global column index of this tile (handles ragged last tile and the
            # duplicate fully-out-of-range tile of an uneven segment split)
            col0 = (s_idx * tiles_per_seg + t) * hw_tile
            mask = (col0 + jax.lax.broadcasted_iota(jnp.int32, (1, hw_tile), 1)) < hw_valid
            x = jnp.where(mask, x, 0)                              # keep NaN/Inf OOB data out

        sw = sw_ref[0]                                             # (2, C): [q^T spv_w ; chq_w]
        m2 = jnp.dot(sw.astype(x.dtype), x, preferred_element_type=f32)        # (2, T)
        w_sp = _hardsigmoid(m2[0:1, :] + qb_ref[0])                # spatial weight (1, T)
        s = w_sp * m2[1:2, :] + scal_ref[1]                        # channel logits (1, T)
        if need_mask:
            s = jnp.where(mask, s, -jnp.inf)

        # online softmax over HW, accumulating the softmax-weighted mean of y = w_sp * x
        m_new = jnp.maximum(m_s[...], jnp.max(s, axis=1, keepdims=True))
        alpha = jnp.exp(m_s[...] - m_new)
        p = jnp.exp(s - m_new)                                     # (1, T)
        l_s[...] = alpha * l_s[...] + jnp.sum(p, axis=1, keepdims=True)
        wp = (w_sp * p).astype(x.dtype)                            # (1, T)
        acc_s[...] = alpha * acc_s[...] + jax.lax.dot_general(
            x, wp, (((1,), (1,)), ((), ())), preferred_element_type=f32)        # (C, 1)
        m_s[...] = m_new

        @pl.when(t == pl.num_programs(2) - 1)
        def _():
            stats_ref[0, 0] = jnp.concatenate([acc_s[...], m_s[...], l_s[...]], axis=0)

    return kernel


def _psa_apply_kernel(x_ref, sw_ref, qb_ref, gcw_ref, o_ref):
    f32 = jnp.float32
    x = x_ref[0]                                                   # (C, T)
    sw = sw_ref[0]                                                 # (2, C)
    att = jnp.dot(sw[0:1, :].astype(x.dtype), x, preferred_element_type=f32) + qb_ref[0]
    w_sp = _hardsigmoid(att).astype(x.dtype)                       # (1, T)
    gcw = gcw_ref[0].astype(x.dtype)                               # (C, 1) = tanh(g)*chan_w
    o_ref[0] = (x + gcw * (w_sp * x)).astype(o_ref.dtype)


def _psa_tiled(x2, packed, params, *, hw_tile, vmem_limit, alias_input=False):
    scal, w3, b3, chq_w, cho_w, cvec = packed
    B, C, HW = x2.shape
    f32 = jnp.float32
    itemsize = x2.dtype.itemsize

    # lane-dense tile sized from C / dtype / VMEM: target ~2 MiB blocks, keep pass-2's
    # 4 double-buffered (in+out) blocks well under the scoped limit.
    if hw_tile is None:
        target = 2 * 1024 * 1024
        cap = (vmem_limit // 2) // max(1, 4 * C * itemsize)
        hw_tile = min(target // max(1, C * itemsize), cap)
    hw_tile = max(128, (int(hw_tile) // 128) * 128)
    hw_tile = min(hw_tile, _cdiv(HW, 128) * 128)
    n_t = _cdiv(HW, hw_tile)

    # split the stats reduction across two "parallel" segments when the batch alone
    # can't occupy both TensorCores (v7x) — merged in the wrapper.
    n_seg = 2 if (B % 2 == 1 and n_t >= 2) else 1
    tiles_per_seg = _cdiv(n_t, n_seg)
    need_mask = (n_seg * tiles_per_seg * hw_tile) != HW
    need_clamp = (n_seg * tiles_per_seg) != n_t

    # tiny per-batch spatial-query work: one XLA reduction over x plus O(B*C) ops.
    xbar = jnp.mean(x2, axis=2, dtype=f32)                                         # (B, C)
    pooled = xbar @ params["spq_w"].astype(f32).T + params["spq_b"].astype(f32)[:, 0]
    q = jax.nn.softmax(pooled, axis=1)                                             # (B, C2)
    qw = q @ params["spv_w"].astype(f32)                                           # (B, C)
    qb = (q @ params["spv_b"].astype(f32))[:, :, None]                             # (B, 1, 1)
    sw = jnp.stack([qw, jnp.broadcast_to(chq_w[0], (B, C))], axis=1)               # (B, 2, C)

    if need_clamp:
        x_map = lambda b, s, t: (b, 0, jnp.minimum(s * tiles_per_seg + t, n_t - 1))
    else:
        x_map = lambda b, s, t: (b, 0, s * tiles_per_seg + t)

    def per_b3(shape):
        return pl.BlockSpec(shape, lambda b, s, t: (b, 0, 0))

    # pass 1: per-(batch, segment) online-softmax partials  (B, S, C+2, 1)
    stats = pl.pallas_call(
        _make_stats_kernel(HW, hw_tile, tiles_per_seg, need_mask),
        out_shape=jax.ShapeDtypeStruct((B, n_seg, C + 2, 1), f32),
        grid=(B, n_seg, tiles_per_seg),
        in_specs=[
            pl.BlockSpec((1, C, hw_tile), x_map),
            per_b3((1, 2, C)),
            per_b3((1, 1, 1)),
            pl.BlockSpec(memory_space=pltpu.MemorySpace.SMEM),
        ],
        out_specs=pl.BlockSpec((1, 1, C + 2, 1), lambda b, s, t: (b, s, 0, 0)),
        scratch_shapes=[pltpu.VMEM((1, 1), f32), pltpu.VMEM((1, 1), f32),
                        pltpu.VMEM((C, 1), f32)],
        compiler_params=pltpu.CompilerParams(
            dimension_semantics=("parallel", "parallel", "arbitrary"),
            vmem_limit_bytes=vmem_limit),
    )(x2, sw, qb, scal)

    # merge segments + tiny channel-attention tail (XLA, O(B*C) work)
    acc = stats[:, :, :C, 0]                                       # (B, S, C)
    m = stats[:, :, C, 0]                                          # (B, S)
    l = stats[:, :, C + 1, 0]                                      # (B, S)
    m_g = jnp.max(m, axis=1, keepdims=True)                        # (B, 1)
    sc = jnp.exp(m - m_g)                                          # (B, S)
    l_g = jnp.sum(l * sc, axis=1)                                  # (B,)
    ybar = jnp.sum(acc * sc[..., None], axis=1) / l_g[:, None]     # (B, C)
    att_ch = ybar @ params["chv_w"].astype(f32).T + params["chv_b"].astype(f32)[:, 0]
    out_ch = att_ch @ params["cho_w"].astype(f32).T + params["cho_b"].astype(f32)[:, 0]
    mu = jnp.mean(out_ch, axis=1, keepdims=True)
    var = jnp.mean((out_ch - mu) ** 2, axis=1, keepdims=True)
    ln = (out_ch - mu) * jax.lax.rsqrt(var + 1e-5) * params["ln_w"].astype(f32)[:, 0] \
        + params["ln_b"].astype(f32)[:, 0]
    gcw = (jnp.tanh(params["gamma"].astype(f32)[0, 0]) * _hardsigmoid(ln))[:, :, None]  # (B,C,1)

    # pass 2: elementwise apply, fully parallel (both TCs on v7x even at B=1).
    # Ragged last tile needs no masking: per-column math only, OOB block writes dropped.
    kwargs = {"input_output_aliases": {0: 0}} if alias_input else {}
    out = pl.pallas_call(
        _psa_apply_kernel,
        out_shape=jax.ShapeDtypeStruct((B, C, HW), x2.dtype),
        grid=(B, n_t),
        in_specs=[
            pl.BlockSpec((1, C, hw_tile), lambda b, t: (b, 0, t)),
            pl.BlockSpec((1, 2, C), lambda b, t: (b, 0, 0)),
            pl.BlockSpec((1, 1, 1), lambda b, t: (b, 0, 0)),
            pl.BlockSpec((1, C, 1), lambda b, t: (b, 0, 0)),
        ],
        out_specs=pl.BlockSpec((1, C, hw_tile), lambda b, t: (b, 0, t)),
        compiler_params=pltpu.CompilerParams(
            dimension_semantics=("parallel", "parallel"),
            vmem_limit_bytes=vmem_limit),
        **kwargs,
    )(x2, sw, qb, gcw)
    return out


# --------------------------------------------------------------------------------------
# public entry point
# --------------------------------------------------------------------------------------
def residual_psa(x, params, *, hw_tile=None, force_tiled=False, alias_input=False,
                 vmem_limit_bytes=None, vmem_budget_bytes=None):
    """ResidualPSA forward.  x: (B, C, H, W) NCHW.  alias_input=True only if x is donated."""
    B, C, H, W = x.shape
    assert C % 2 == 0, "channel count must be even (C // 2 attention width)"
    HW = H * W
    x2 = x.reshape(B, C, HW)
    packed = _pack_params(params)
    limit, budget = _vmem_limits(vmem_limit_bytes, vmem_budget_bytes)

    # fused-kernel footprint: in/out slab buffering (single-buffered at B==1) plus a couple
    # of elementwise slab temporaries and the (1..2, HW) f32 vectors.
    slab = C * HW * x.dtype.itemsize
    bufs = 2 if B == 1 else 4
    fused_bytes = (bufs + 2) * slab + 10 * HW * 4 + (1 << 20)

    if force_tiled or fused_bytes > budget:
        out = _psa_tiled(x2, packed, params, hw_tile=hw_tile,
                         vmem_limit=limit, alias_input=alias_input)
    else:
        try:
            out = _psa_fused(x2, packed, vmem_limit=limit, alias_input=alias_input)
        except Exception:
            out = _psa_tiled(x2, packed, params, hw_tile=hw_tile,
                             vmem_limit=limit, alias_input=alias_input)
    return out.reshape(B, C, H, W)


# --------------------------------------------------------------------------------------
# pure-JAX reference mirroring the PyTorch forward
# --------------------------------------------------------------------------------------
def reference(x, p):
    B, C, H, W = x.shape
    HW = H * W
    x2 = x.reshape(B, C, HW).astype(jnp.float32)
    # Spatial attention
    v_sp = jnp.einsum("oc,bcn->bon", p["spv_w"], x2) + p["spv_b"][None]
    q_sp = jnp.einsum("oc,bcn->bon", p["spq_w"], x2) + p["spq_b"][None]
    pooled = jnp.mean(q_sp, axis=2, keepdims=True)
    q = jax.nn.softmax(pooled, axis=1)
    att_sp = jnp.sum(q * v_sp, axis=1, keepdims=True)
    y = _hardsigmoid(att_sp) * x2
    # Channel attention
    q_ch = jnp.einsum("oc,bcn->bon", p["chq_w"], y) + p["chq_b"][None]
    q_ch = jax.nn.softmax(q_ch, axis=2)
    v_ch = jnp.einsum("oc,bcn->bon", p["chv_w"], y) + p["chv_b"][None]
    att_ch = jnp.sum(v_ch * q_ch, axis=2, keepdims=True)
    out_ch = jnp.einsum("oc,bcn->bon", p["cho_w"], att_ch) + p["cho_b"][None]
    mu = jnp.mean(out_ch, axis=1, keepdims=True)
    var = jnp.mean((out_ch - mu) ** 2, axis=1, keepdims=True)
    ln = (out_ch - mu) * jax.lax.rsqrt(var + 1e-5) * p["ln_w"][None] + p["ln_b"][None]
    refined = _hardsigmoid(ln) * y
    out = x2 + jnp.tanh(p["gamma"][0, 0]) * refined
    return out.reshape(B, C, H, W)


if __name__ == "__main__":
    B, C, H, W = 2, 8, 16, 16
    C2 = C // 2

    key = jax.random.PRNGKey(0)
    keys = jax.random.split(key, 13)

    def rnd(k, shape, scale=0.2):
        return (scale * jax.random.normal(k, shape)).astype(jnp.float32)

    params = {
        "spv_w": rnd(keys[0], (C2, C)), "spv_b": rnd(keys[1], (C2, 1)),
        "spq_w": rnd(keys[2], (C2, C)), "spq_b": rnd(keys[3], (C2, 1)),
        "chq_w": rnd(keys[4], (1, C)),  "chq_b": rnd(keys[5], (1, 1)),
        "chv_w": rnd(keys[6], (C2, C)), "chv_b": rnd(keys[7], (C2, 1)),
        "cho_w": rnd(keys[8], (C, C2)), "cho_b": rnd(keys[9], (C, 1)),
        "ln_w": jnp.ones((C, 1), jnp.float32),
        "ln_b": jnp.zeros((C, 1), jnp.float32),
        # PyTorch inits gamma to zeros(1) (output == x); use a nonzero value so the
        # attention path actually contributes to the check.
        "gamma": jnp.full((1, 1), 0.5, jnp.float32),
    }

    x = jax.random.normal(keys[10], (B, C, H, W), jnp.float32)
    ref = reference(x, params)

    # tolerance slightly looser than strict 1e-5: the algebraic rewrites legally
    # reorder f32 reductions relative to the reference.
    TOL = dict(atol=2e-5, rtol=2e-5)

    # fused single-pass path (whole (C, HW) slab per batch row)
    out_fused = jax.block_until_ready(residual_psa(x, params))
    np.testing.assert_allclose(np.asarray(out_fused), np.asarray(ref), **TOL)

    # HW-tiled two-pass path, exact multiple of the tile (no masking, no segments)
    out_tiled = jax.block_until_ready(residual_psa(x, params, force_tiled=True, hw_tile=128))
    np.testing.assert_allclose(np.asarray(out_tiled), np.asarray(ref), **TOL)

    # ragged spatial extent, single tile (exercises in-kernel masking, no pad/slice)
    x_small = jax.random.normal(keys[11], (1, C, 10, 10), jnp.float32)
    ref_small = reference(x_small, params)
    out_small = jax.block_until_ready(residual_psa(x_small, params, force_tiled=True, hw_tile=128))
    np.testing.assert_allclose(np.asarray(out_small), np.asarray(ref_small), **TOL)

    # B==1 fused path (exercises the single-buffered pipeline_mode and its fallback)
    out_small_fused = jax.block_until_ready(residual_psa(x_small, params))
    np.testing.assert_allclose(np.asarray(out_small_fused), np.asarray(ref_small), **TOL)

    # B==1, ragged, 3 tiles -> 2-segment stats pass with clamped duplicate tile
    x_seg = jax.random.normal(keys[12], (1, C, 18, 18), jnp.float32)
    ref_seg = reference(x_seg, params)
    out_seg = jax.block_until_ready(residual_psa(x_seg, params, force_tiled=True, hw_tile=128))
    np.testing.assert_allclose(np.asarray(out_seg), np.asarray(ref_seg), **TOL)

    # auto-sized hw_tile (VMEM/C/dtype-derived) on the tiled path
    out_auto = jax.block_until_ready(residual_psa(x_seg, params, force_tiled=True))
    np.testing.assert_allclose(np.asarray(out_auto), np.asarray(ref_seg), **TOL)

    print("KERNEL_OK")
</pallas_src>

<mosaic_0001>
module attributes {stable_mosaic.version = 11 : i64} {
  func.func @_psa_fused_kernel(%arg0: i32, %arg1: memref<1x8x256xf32, #tpu.memory_space<vmem>>, %arg2: memref<2xf32, #tpu.memory_space<smem>>, %arg3: memref<3x4x8xf32, #tpu.memory_space<vmem>>, %arg4: memref<3x4x1xf32, #tpu.memory_space<vmem>>, %arg5: memref<1x8xf32, #tpu.memory_space<vmem>>, %arg6: memref<8x4xf32, #tpu.memory_space<vmem>>, %arg7: memref<3x8x1xf32, #tpu.memory_space<vmem>>, %arg8: memref<1x8x256xf32, #tpu.memory_space<vmem>>) attributes {dimension_semantics = [#tpu.dimension_semantics<parallel>], iteration_bounds = array<i64: 2>, scalar_prefetch = 0 : i64, scratch_operands = 0 : i64, tpu.core_type = #tpu.core_type<tc>, window_params = [{transform_indices = @transform_0, window_bounds = array<i64: 1, 8, 256>}, {transform_indices = @transform_1, window_bounds = array<i64: 2>}, {pipeline_mode = #tpu.pipeline_mode<synchronous>, transform_indices = @transform_2, window_bounds = array<i64: 3, 4, 8>}, {pipeline_mode = #tpu.pipeline_mode<synchronous>, transform_indices = @transform_3, window_bounds = array<i64: 3, 4, 1>}, {pipeline_mode = #tpu.pipeline_mode<synchronous>, transform_indices = @transform_4, window_bounds = array<i64: 1, 8>}, {pipeline_mode = #tpu.pipeline_mode<synchronous>, transform_indices = @transform_5, window_bounds = array<i64: 8, 4>}, {pipeline_mode = #tpu.pipeline_mode<synchronous>, transform_indices = @transform_6, window_bounds = array<i64: 3, 8, 1>}, {transform_indices = @transform_7, window_bounds = array<i64: 1, 8, 256>}]} {
    %c0 = arith.constant 0 : index
    %c0_0 = arith.constant 0 : index
    %c0_1 = arith.constant 0 : index
    %0 = vector.load %arg1[%c0, %c0_0, %c0_1] : memref<1x8x256xf32, #tpu.memory_space<vmem>>, vector<1x8x256xf32>
    %1 = vector.shape_cast %0 : vector<1x8x256xf32> to vector<8x256xf32>
    %cst = arith.constant dense<0.000000e+00> : vector<8xf32>
    %2 = vector.multi_reduction <add>, %1, %cst [1] : vector<8x256xf32> to vector<8xf32>
    %3 = vector.shape_cast %2 : vector<8xf32> to vector<8x1xf32>
    %cst_2 = arith.constant 2.560000e+02 : f32
    %4 = vector.broadcast %cst_2 : f32 to vector<8x1xf32>
    %5 = arith.divf %3, %4 : vector<8x1xf32>
    %c1 = arith.constant 1 : index
    %c0_3 = arith.constant 0 : index
    %c0_4 = arith.constant 0 : index
    %6 = vector.load %arg3[%c1, %c0_3, %c0_4] : memref<3x4x8xf32, #tpu.memory_space<vmem>>, vector<1x4x8xf32>
    %7 = vector.shape_cast %6 : vector<1x4x8xf32> to vector<4x8xf32>
    %cst_5 = arith.constant dense<0.000000e+00> : vector<4x1xf32>
    %8 = tpu.matmul %7, %5, %cst_5 {dimension_numbers = #tpu.dot_dimension_numbers<[1], [0], [0], [1], [0, 0, 1, 1], [], []>} : vector<4x8xf32>, vector<8x1xf32>, vector<4x1xf32> -> vector<4x1xf32>
    %c1_6 = arith.constant 1 : index
    %c0_7 = arith.constant 0 : index
    %c0_8 = arith.constant 0 : index
    %9 = vector.load %arg4[%c1_6, %c0_7, %c0_8] : memref<3x4x1xf32, #tpu.memory_space<vmem>>, vector<1x4x1xf32>
    %10 = vector.shape_cast %9 : vector<1x4x1xf32> to vector<4x1xf32>
    %11 = arith.addf %8, %10 : vector<4x1xf32>
    %cst_9 = arith.constant dense<0xFF800000> : vector<1xf32>
    %12 = vector.multi_reduction <maximumf>, %11, %cst_9 [0] : vector<4x1xf32> to vector<1xf32>
    %13 = vector.shape_cast %12 : vector<1xf32> to vector<1x1xf32>
    %14 = vector.broadcast %13 : vector<1x1xf32> to vector<4x1xf32>
    %15 = arith.subf %11, %14 : vector<4x1xf32>
    %16 = math.exp %15 : vector<4x1xf32>
    %cst_10 = arith.constant dense<0.000000e+00> : vector<1xf32>
    %17 = vector.multi_reduction <add>, %16, %cst_10 [0] : vector<4x1xf32> to vector<1xf32>
    %18 = vector.shape_cast %17 : vector<1xf32> to vector<1x1xf32>
    %19 = tpu.reciprocal %18 : vector<1x1xf32> -> vector<1x1xf32>
    %20 = vector.broadcast %19 : vector<1x1xf32> to vector<4x1xf32>
    %21 = arith.mulf %16, %20 : vector<4x1xf32>
    %c0_11 = arith.constant 0 : index
    %c0_12 = arith.constant 0 : index
    %c0_13 = arith.constant 0 : index
    %22 = vector.load %arg3[%c0_11, %c0_12, %c0_13] : memref<3x4x8xf32, #tpu.memory_space<vmem>>, vector<1x4x8xf32>
    %23 = vector.shape_cast %22 : vector<1x4x8xf32> to vector<4x8xf32>
    %24 = vector.broadcast %21 : vector<4x1xf32> to vector<4x8xf32>
    %25 = arith.mulf %24, %23 : vector<4x8xf32>
    %cst_14 = arith.constant dense<0.000000e+00> : vector<8xf32>
    %26 = vector.multi_reduction <add>, %25, %cst_14 [0] : vector<4x8xf32> to vector<8xf32>
    %27 = vector.shape_cast %26 : vector<8xf32> to vector<1x8xf32>
    %c0_15 = arith.constant 0 : index
    %c0_16 = arith.constant 0 : index
    %c0_17 = arith.constant 0 : index
    %28 = vector.load %arg4[%c0_15, %c0_16, %c0_17] : memref<3x4x1xf32, #tpu.memory_space<vmem>>, vector<1x4x1xf32>
    %29 = vector.shape_cast %28 : vector<1x4x1xf32> to vector<4x1xf32>
    %30 = arith.mulf %21, %29 : vector<4x1xf32>
    %cst_18 = arith.constant dense<0.000000e+00> : vector<1xf32>
    %31 = vector.multi_reduction <add>, %30, %cst_18 [0] : vector<4x1xf32> to vector<1xf32>
    %32 = vector.shape_cast %31 : vector<1xf32> to vector<1x1xf32>
    %c0_19 = arith.constant 0 : index
    %c0_20 = arith.constant 0 : index
    %33 = vector.load %arg5[%c0_19, %c0_20] : memref<1x8xf32, #tpu.memory_space<vmem>>, vector<1x8xf32>
    %34 = tpu.concatenate %27, %33 in 0 : vector<1x8xf32>, vector<1x8xf32> -> vector<2x8xf32>
    %cst_21 = arith.constant dense<0.000000e+00> : vector<2x256xf32>
    %35 = tpu.matmul %34, %1, %cst_21 {dimension_numbers = #tpu.dot_dimension_numbers<[1], [0], [0], [1], [0, 0, 1, 1], [], []>} : vector<2x8xf32>, vector<8x256xf32>, vector<2x256xf32> -> vector<2x256xf32>
    %36 = vector.extract_strided_slice %35 {offsets = [0, 0], sizes = [1, 256], strides = [1, 1]} : vector<2x256xf32> to vector<1x256xf32>
    %37 = vector.broadcast %32 : vector<1x1xf32> to vector<1x256xf32>
    %38 = arith.addf %36, %37 : vector<1x256xf32>
    %cst_22 = arith.constant 6.000000e+00 : f32
    %39 = vector.broadcast %cst_22 : f32 to vector<1x256xf32>
    %40 = arith.divf %38, %39 : vector<1x256xf32>
    %cst_23 = arith.constant 5.000000e-01 : f32
    %41 = vector.broadcast %cst_23 : f32 to vector<1x256xf32>
    %42 = arith.addf %40, %41 : vector<1x256xf32>
    %cst_24 = arith.constant 0.000000e+00 : f32
    %cst_25 = arith.constant 1.000000e+00 : f32
    %43 = vector.broadcast %cst_24 : f32 to vector<1x256xf32>
    %44 = arith.maximumf %43, %42 : vector<1x256xf32>
    %45 = vector.broadcast %cst_25 : f32 to vector<1x256xf32>
    %46 = arith.minimumf %45, %44 : vector<1x256xf32>
    %47 = vector.extract_strided_slice %35 {offsets = [1, 0], sizes = [1, 256], strides = [1, 1]} : vector<2x256xf32> to vector<1x256xf32>
    %48 = arith.mulf %46, %47 : vector<1x256xf32>
    %c1_26 = arith.constant 1 : index
    %49 = memref.load %arg2[%c1_26] : memref<2xf32, #tpu.memory_space<smem>>
    %50 = vector.broadcast %49 : f32 to vector<1x256xf32>
    %51 = arith.addf %48, %50 : vector<1x256xf32>
    %cst_27 = arith.constant dense<0xFF800000> : vector<1xf32>
    %52 = vector.multi_reduction <maximumf>, %51, %cst_27 [1] : vector<1x256xf32> to vector<1xf32>
    %53 = vector.shape_cast %52 : vector<1xf32> to vector<1x1xf32>
    %54 = vector.broadcast %53 : vector<1x1xf32> to vector<1x256xf32>
    %55 = arith.subf %51, %54 : vector<1x256xf32>
    %56 = math.exp %55 : vector<1x256xf32>
    %cst_28 = arith.constant dense<0.000000e+00> : vector<1xf32>
    %57 = vector.multi_reduction <add>, %56, %cst_28 [1] : vector<1x256xf32> to vector<1xf32>
    %58 = vector.shape_cast %57 : vector<1xf32> to vector<1x1xf32>
    %59 = tpu.reciprocal %58 : vector<1x1xf32> -> vector<1x1xf32>
    %60 = arith.mulf %46, %56 : vector<1x256xf32>
    %cst_29 = arith.constant dense<0.000000e+00> : vector<8x1xf32>
    %61 = tpu.matmul %1, %60, %cst_29 {dimension_numbers = #tpu.dot_dimension_numbers<[1], [1], [0], [0], [0, 0, 1, 0], [], []>} : vector<8x256xf32>, vector<1x256xf32>, vector<8x1xf32> -> vector<8x1xf32>
    %62 = vector.broadcast %59 : vector<1x1xf32> to vector<8x1xf32>
    %63 = arith.mulf %61, %62 : vector<8x1xf32>
    %c2 = arith.constant 2 : index
    %c0_30 = arith.constant 0 : index
    %c0_31 = arith.constant 0 : index
    %64 = vector.load %arg3[%c2, %c0_30, %c0_31] : memref<3x4x8xf32, #tpu.memory_space<vmem>>, vector<1x4x8xf32>
    %65 = vector.shape_cast %64 : vector<1x4x8xf32> to vector<4x8xf32>
    %cst_32 = arith.constant dense<0.000000e+00> : vector<4x1xf32>
    %66 = tpu.matmul %65, %63, %cst_32 {dimension_numbers = #tpu.dot_dimension_numbers<[1], [0], [0], [1], [0, 0, 1, 1], [], []>} : vector<4x8xf32>, vector<8x1xf32>, vector<4x1xf32> -> vector<4x1xf32>
    %c2_33 = arith.constant 2 : index
    %c0_34 = arith.constant 0 : index
    %c0_35 = arith.constant 0 : index
    %67 = vector.load %arg4[%c2_33, %c0_34, %c0_35] : memref<3x4x1xf32, #tpu.memory_space<vmem>>, vector<1x4x1xf32>
    %68 = vector.shape_cast %67 : vector<1x4x1xf32> to vector<4x1xf32>
    %69 = arith.addf %66, %68 : vector<4x1xf32>
    %c0_36 = arith.constant 0 : index
    %c0_37 = arith.constant 0 : index
    %70 = vector.load %arg6[%c0_36, %c0_37] : memref<8x4xf32, #tpu.memory_space<vmem>>, vector<8x4xf32>
    %cst_38 = arith.constant dense<0.000000e+00> : vector<8x1xf32>
    %71 = tpu.matmul %70, %69, %cst_38 {dimension_numbers = #tpu.dot_dimension_numbers<[1], [0], [0], [1], [0, 0, 1, 1], [], []>} : vector<8x4xf32>, vector<4x1xf32>, vector<8x1xf32> -> vector<8x1xf32>
    %c0_39 = arith.constant 0 : index
    %c0_40 = arith.constant 0 : index
    %c0_41 = arith.constant 0 : index
    %72 = vector.load %arg7[%c0_39, %c0_40, %c0_41] : memref<3x8x1xf32, #tpu.memory_space<vmem>>, vector<1x8x1xf32>
    %73 = vector.shape_cast %72 : vector<1x8x1xf32> to vector<8x1xf32>
    %74 = arith.addf %71, %73 : vector<8x1xf32>
    %cst_42 = arith.constant dense<0.000000e+00> : vector<1xf32>
    %75 = vector.multi_reduction <add>, %74, %cst_42 [0] : vector<8x1xf32> to vector<1xf32>
    %76 = vector.shape_cast %75 : vector<1xf32> to vector<1x1xf32>
    %cst_43 = arith.constant 8.000000e+00 : f32
    %77 = vector.broadcast %cst_43 : f32 to vector<1x1xf32>
    %78 = arith.divf %76, %77 : vector<1x1xf32>
    %79 = vector.broadcast %78 : vector<1x1xf32> to vector<8x1xf32>
    %80 = arith.subf %74, %79 : vector<8x1xf32>
    %81 = arith.mulf %80, %80 : vector<8x1xf32>
    %cst_44 = arith.constant dense<0.000000e+00> : vector<1xf32>
    %82 = vector.multi_reduction <add>, %81, %cst_44 [0] : vector<8x1xf32> to vector<1xf32>
    %83 = vector.shape_cast %82 : vector<1xf32> to vector<1x1xf32>
    %cst_45 = arith.constant 8.000000e+00 : f32
    %84 = vector.broadcast %cst_45 : f32 to vector<1x1xf32>
    %85 = arith.divf %83, %84 : vector<1x1xf32>
    %86 = vector.broadcast %78 : vector<1x1xf32> to vector<8x1xf32>
    %87 = arith.subf %74, %86 : vector<8x1xf32>
    %cst_46 = arith.constant 9.99999974E-6 : f32
    %88 = vector.broadcast %cst_46 : f32 to vector<1x1xf32>
    %89 = arith.addf %85, %88 : vector<1x1xf32>
    %90 = math.rsqrt %89 : vector<1x1xf32>
    %91 = vector.broadcast %90 : vector<1x1xf32> to vector<8x1xf32>
    %92 = arith.mulf %87, %91 : vector<8x1xf32>
    %c1_47 = arith.constant 1 : index
    %c0_48 = arith.constant 0 : index
    %c0_49 = arith.constant 0 : index
    %93 = vector.load %arg7[%c1_47, %c0_48, %c0_49] : memref<3x8x1xf32, #tpu.memory_space<vmem>>, vector<1x8x1xf32>
    %94 = vector.shape_cast %93 : vector<1x8x1xf32> to vector<8x1xf32>
    %95 = arith.mulf %92, %94 : vector<8x1xf32>
    %c2_50 = arith.constant 2 : index
    %c0_51 = arith.constant 0 : index
    %c0_52 = arith.constant 0 : index
    %96 = vector.load %arg7[%c2_50, %c0_51, %c0_52] : memref<3x8x1xf32, #tpu.memory_space<vmem>>, vector<1x8x1xf32>
    %97 = vector.shape_cast %96 : vector<1x8x1xf32> to vector<8x1xf32>
    %98 = arith.addf %95, %97 : vector<8x1xf32>
    %cst_53 = arith.constant 6.000000e+00 : f32
    %99 = vector.broadcast %cst_53 : f32 to vector<8x1xf32>
    %100 = arith.divf %98, %99 : vector<8x1xf32>
    %cst_54 = arith.constant 5.000000e-01 : f32
    %101 = vector.broadcast %cst_54 : f32 to vector<8x1xf32>
    %102 = arith.addf %100, %101 : vector<8x1xf32>
    %cst_55 = arith.constant 0.000000e+00 : f32
    %cst_56 = arith.constant 1.000000e+00 : f32
    %103 = vector.broadcast %cst_55 : f32 to vector<8x1xf32>
    %104 = arith.maximumf %103, %102 : vector<8x1xf32>
    %105 = vector.broadcast %cst_56 : f32 to vector<8x1xf32>
    %106 = arith.minimumf %105, %104 : vector<8x1xf32>
    %c0_57 = arith.constant 0 : index
    %107 = memref.load %arg2[%c0_57] : memref<2xf32, #tpu.memory_space<smem>>
    %108 = vector.broadcast %107 : f32 to vector<8x1xf32>
    %109 = arith.mulf %108, %106 : vector<8x1xf32>
    %110 = vector.broadcast %46 : vector<1x256xf32> to vector<8x256xf32>
    %111 = arith.mulf %110, %1 : vector<8x256xf32>
    %112 = vector.broadcast %109 : vector<8x1xf32> to vector<8x256xf32>
    %113 = arith.mulf %112, %111 : vector<8x256xf32>
    %114 = arith.addf %1, %113 : vector<8x256xf32>
    %c0_58 = arith.constant 0 : index
    %c0_59 = arith.constant 0 : index
    %c0_60 = arith.constant 0 : index
    %115 = vector.load %arg8[%c0_58, %c0_59, %c0_60] : memref<1x8x256xf32, #tpu.memory_space<vmem>>, vector<1x8x256xf32>
    %116 = vector.shape_cast %115 : vector<1x8x256xf32> to vector<8x256xf32>
    %117 = vector.shape_cast %114 : vector<8x256xf32> to vector<1x8x256xf32>
    tpu.vector_store %arg8[%c0_58, %c0_59, %c0_60], %117 {strides = array<i32>} : memref<1x8x256xf32, #tpu.memory_space<vmem>>, vector<1x8x256xf32>,
    return
  }
  func.func @transform_0(%arg0: i32) -> (i32, i32, i32) {
    %c0_i32 = arith.constant 0 : i32
    %c0_i32_0 = arith.constant 0 : i32
    %c0_i32_1 = arith.constant 0 : i32
    return %arg0, %c0_i32, %c0_i32_0 : i32, i32, i32
  }
  func.func @transform_1(%arg0: i32) -> i32 {
    %c0_i32 = arith.constant 0 : i32
    %c0_i32_0 = arith.constant 0 : i32
    return %c0_i32 : i32
  }
  func.func @transform_2(%arg0: i32) -> (i32, i32, i32) {
    %c0_i32 = arith.constant 0 : i32
    %c0_i32_0 = arith.constant 0 : i32
    %c0_i32_1 = arith.constant 0 : i32
    %c0_i32_2 = arith.constant 0 : i32
    return %c0_i32, %c0_i32_0, %c0_i32_1 : i32, i32, i32
  }
  func.func @transform_3(%arg0: i32) -> (i32, i32, i32) {
    %c0_i32 = arith.constant 0 : i32
    %c0_i32_0 = arith.constant 0 : i32
    %c0_i32_1 = arith.constant 0 : i32
    %c0_i32_2 = arith.constant 0 : i32
    return %c0_i32, %c0_i32_0, %c0_i32_1 : i32, i32, i32
  }
  func.func @transform_4(%arg0: i32) -> (i32, i32) {
    %c0_i32 = arith.constant 0 : i32
    %c0_i32_0 = arith.constant 0 : i32
    %c0_i32_1 = arith.constant 0 : i32
    return %c0_i32, %c0_i32_0 : i32, i32
  }
  func.func @transform_5(%arg0: i32) -> (i32, i32) {
    %c0_i32 = arith.constant 0 : i32
    %c0_i32_0 = arith.constant 0 : i32
    %c0_i32_1 = arith.constant 0 : i32
    return %c0_i32, %c0_i32_0 : i32, i32
  }
  func.func @transform_6(%arg0: i32) -> (i32, i32, i32) {
    %c0_i32 = arith.constant 0 : i32
    %c0_i32_0 = arith.constant 0 : i32
    %c0_i32_1 = arith.constant 0 : i32
    %c0_i32_2 = arith.constant 0 : i32
    return %c0_i32, %c0_i32_0, %c0_i32_1 : i32, i32, i32
  }
  func.func @transform_7(%arg0: i32) -> (i32, i32, i32) {
    %c0_i32 = arith.constant 0 : i32
    %c0_i32_0 = arith.constant 0 : i32
    %c0_i32_1 = arith.constant 0 : i32
    return %arg0, %c0_i32, %c0_i32_0 : i32, i32, i32
  }
}

module attributes {stable_mosaic.version = 11 : i64} {
  func.func @kernel(%arg0: i32, %arg1: i32, %arg2: i32, %arg3: memref<1x8x256xf32, #tpu.memory_space<vmem>>, %arg4: memref<1x2x8xf32, #tpu.memory_space<vmem>>, %arg5: memref<1x1x1xf32, #tpu.memory_space<vmem>>, %arg6: memref<2xf32, #tpu.memory_space<smem>>, %arg7: memref<1x1x10x1xf32, #tpu.memory_space<vmem>>, %arg8: memref<1x1xf32, #tpu.memory_space<vmem>>, %arg9: memref<1x1xf32, #tpu.memory_space<vmem>>, %arg10: memref<8x1xf32, #tpu.memory_space<vmem>>) attributes {dimension_semantics = [#tpu.dimension_semantics<parallel>, #tpu.dimension_semantics<parallel>, #tpu.dimension_semantics<arbitrary>], iteration_bounds = array<i64: 2, 1, 1>, scalar_prefetch = 0 : i64, scratch_operands = 3 : i64, tpu.core_type = #tpu.core_type<tc>, window_params = [{transform_indices = @transform_0, window_bounds = array<i64: 1, 8, 256>}, {transform_indices = @transform_1, window_bounds = array<i64: 1, 2, 8>}, {transform_indices = @transform_2, window_bounds = array<i64: 1, 1, 1>}, {transform_indices = @transform_3, window_bounds = array<i64: 2>}, {transform_indices = @transform_4, window_bounds = array<i64: 1, 1, 10, 1>}]} {
    %c0_i32 = arith.constant 0 : i32
    %0 = arith.cmpi eq, %arg2, %c0_i32 : i32
    %1 = arith.extui %0 : i1 to i32
    %c0_i32_0 = arith.constant 0 : i32
    %2 = arith.cmpi ne, %1, %c0_i32_0 : i32
    scf.if %2 {
      %cst_32 = arith.constant 0xFF800000 : f32
      %53 = vector.broadcast %cst_32 : f32 to vector<1x1xf32>
      %c0_33 = arith.constant 0 : index
      %c0_34 = arith.constant 0 : index
      %54 = vector.load %arg8[%c0_33, %c0_34] : memref<1x1xf32, #tpu.memory_space<vmem>>, vector<1x1xf32>
      tpu.vector_store %arg8[%c0_33, %c0_34], %53 {strides = array<i32>} : memref<1x1xf32, #tpu.memory_space<vmem>>, vector<1x1xf32>,
      %cst_35 = arith.constant 0.000000e+00 : f32
      %55 = vector.broadcast %cst_35 : f32 to vector<1x1xf32>
      %c0_36 = arith.constant 0 : index
      %c0_37 = arith.constant 0 : index
      %56 = vector.load %arg9[%c0_36, %c0_37] : memref<1x1xf32, #tpu.memory_space<vmem>>, vector<1x1xf32>
      tpu.vector_store %arg9[%c0_36, %c0_37], %55 {strides = array<i32>} : memref<1x1xf32, #tpu.memory_space<vmem>>, vector<1x1xf32>,
      %cst_38 = arith.constant 0.000000e+00 : f32
      %57 = vector.broadcast %cst_38 : f32 to vector<8x1xf32>
      %c0_39 = arith.constant 0 : index
      %c0_40 = arith.constant 0 : index
      %58 = vector.load %arg10[%c0_39, %c0_40] : memref<8x1xf32, #tpu.memory_space<vmem>>, vector<8x1xf32>
      tpu.vector_store %arg10[%c0_39, %c0_40], %57 {strides = array<i32>} : memref<8x1xf32, #tpu.memory_space<vmem>>, vector<8x1xf32>,
    } else {
    }
    %c0 = arith.constant 0 : index
    %c0_1 = arith.constant 0 : index
    %c0_2 = arith.constant 0 : index
    %3 = vector.load %arg3[%c0, %c0_1, %c0_2] : memref<1x8x256xf32, #tpu.memory_space<vmem>>, vector<1x8x256xf32>
    %4 = vector.shape_cast %3 : vector<1x8x256xf32> to vector<8x256xf32>
    %c0_3 = arith.constant 0 : index
    %c0_4 = arith.constant 0 : index
    %c0_5 = arith.constant 0 : index
    %5 = vector.load %arg4[%c0_3, %c0_4, %c0_5] : memref<1x2x8xf32, #tpu.memory_space<vmem>>, vector<1x2x8xf32>
    %6 = vector.shape_cast %5 : vector<1x2x8xf32> to vector<2x8xf32>
    %cst = arith.constant dense<0.000000e+00> : vector<2x256xf32>
    %7 = tpu.matmul %6, %4, %cst {dimension_numbers = #tpu.dot_dimension_numbers<[1], [0], [0], [1], [0, 0, 1, 1], [], []>} : vector<2x8xf32>, vector<8x256xf32>, vector<2x256xf32> -> vector<2x256xf32>
    %8 = vector.extract_strided_slice %7 {offsets = [0, 0], sizes = [1, 256], strides = [1, 1]} : vector<2x256xf32> to vector<1x256xf32>
    %c0_6 = arith.constant 0 : index
    %c0_7 = arith.constant 0 : index
    %c0_8 = arith.constant 0 : index
    %9 = vector.load %arg5[%c0_6, %c0_7, %c0_8] : memref<1x1x1xf32, #tpu.memory_space<vmem>>, vector<1x1x1xf32>
    %10 = vector.shape_cast %9 : vector<1x1x1xf32> to vector<1x1xf32>
    %11 = vector.broadcast %10 : vector<1x1xf32> to vector<1x256xf32>
    %12 = arith.addf %8, %11 : vector<1x256xf32>
    %cst_9 = arith.constant 6.000000e+00 : f32
    %13 = vector.broadcast %cst_9 : f32 to vector<1x256xf32>
    %14 = arith.divf %12, %13 : vector<1x256xf32>
    %cst_10 = arith.constant 5.000000e-01 : f32
    %15 = vector.broadcast %cst_10 : f32 to vector<1x256xf32>
    %16 = arith.addf %14, %15 : vector<1x256xf32>
    %cst_11 = arith.constant 0.000000e+00 : f32
    %cst_12 = arith.constant 1.000000e+00 : f32
    %17 = vector.broadcast %cst_11 : f32 to vector<1x256xf32>
    %18 = arith.maximumf %17, %16 : vector<1x256xf32>
    %19 = vector.broadcast %cst_12 : f32 to vector<1x256xf32>
    %20 = arith.minimumf %19, %18 : vector<1x256xf32>
    %21 = vector.extract_strided_slice %7 {offsets = [1, 0], sizes = [1, 256], strides = [1, 1]} : vector<2x256xf32> to vector<1x256xf32>
    %22 = arith.mulf %20, %21 : vector<1x256xf32>
    %c1 = arith.constant 1 : index
    %23 = memref.load %arg6[%c1] : memref<2xf32, #tpu.memory_space<smem>>
    %24 = vector.broadcast %23 : f32 to vector<1x256xf32>
    %25 = arith.addf %22, %24 : vector<1x256xf32>
    %c0_13 = arith.constant 0 : index
    %c0_14 = arith.constant 0 : index
    %26 = vector.load %arg8[%c0_13, %c0_14] : memref<1x1xf32, #tpu.memory_space<vmem>>, vector<1x1xf32>
    %cst_15 = arith.constant dense<0xFF800000> : vector<1xf32>
    %27 = vector.multi_reduction <maximumf>, %25, %cst_15 [1] : vector<1x256xf32> to vector<1xf32>
    %28 = vector.shape_cast %27 : vector<1xf32> to vector<1x1xf32>
    %29 = arith.maximumf %26, %28 : vector<1x1xf32>
    %c0_16 = arith.constant 0 : index
    %c0_17 = arith.constant 0 : index
    %30 = vector.load %arg8[%c0_16, %c0_17] : memref<1x1xf32, #tpu.memory_space<vmem>>, vector<1x1xf32>
    %31 = arith.subf %30, %29 : vector<1x1xf32>
    %32 = math.exp %31 : vector<1x1xf32>
    %33 = vector.broadcast %29 : vector<1x1xf32> to vector<1x256xf32>
    %34 = arith.subf %25, %33 : vector<1x256xf32>
    %35 = math.exp %34 : vector<1x256xf32>
    %c0_18 = arith.constant 0 : index
    %c0_19 = arith.constant 0 : index
    %36 = vector.load %arg9[%c0_18, %c0_19] : memref<1x1xf32, #tpu.memory_space<vmem>>, vector<1x1xf32>
    %37 = arith.mulf %32, %36 : vector<1x1xf32>
    %cst_20 = arith.constant dense<0.000000e+00> : vector<1xf32>
    %38 = vector.multi_reduction <add>, %35, %cst_20 [1] : vector<1x256xf32> to vector<1xf32>
    %39 = vector.shape_cast %38 : vector<1xf32> to vector<1x1xf32>
    %40 = arith.addf %37, %39 : vector<1x1xf32>
    %c0_21 = arith.constant 0 : index
    %c0_22 = arith.constant 0 : index
    %41 = vector.load %arg9[%c0_21, %c0_22] : memref<1x1xf32, #tpu.memory_space<vmem>>, vector<1x1xf32>
    tpu.vector_store %arg9[%c0_21, %c0_22], %40 {strides = array<i32>} : memref<1x1xf32, #tpu.memory_space<vmem>>, vector<1x1xf32>,
    %42 = arith.mulf %20, %35 : vector<1x256xf32>
    %c0_23 = arith.constant 0 : index
    %c0_24 = arith.constant 0 : index
    %43 = vector.load %arg10[%c0_23, %c0_24] : memref<8x1xf32, #tpu.memory_space<vmem>>, vector<8x1xf32>
    %44 = vector.broadcast %32 : vector<1x1xf32> to vector<8x1xf32>
    %45 = arith.mulf %44, %43 : vector<8x1xf32>
    %cst_25 = arith.constant dense<0.000000e+00> : vector<8x1xf32>
    %46 = tpu.matmul %4, %42, %cst_25 {dimension_numbers = #tpu.dot_dimension_numbers<[1], [1], [0], [0], [0, 0, 1, 0], [], []>} : vector<8x256xf32>, vector<1x256xf32>, vector<8x1xf32> -> vector<8x1xf32>
    %47 = arith.addf %45, %46 : vector<8x1xf32>
    %c0_26 = arith.constant 0 : index
    %c0_27 = arith.constant 0 : index
    %48 = vector.load %arg10[%c0_26, %c0_27] : memref<8x1xf32, #tpu.memory_space<vmem>>, vector<8x1xf32>
    tpu.vector_store %arg10[%c0_26, %c0_27], %47 {strides = array<i32>} : memref<8x1xf32, #tpu.memory_space<vmem>>, vector<8x1xf32>,
    %c0_28 = arith.constant 0 : index
    %c0_29 = arith.constant 0 : index
    %49 = vector.load %arg8[%c0_28, %c0_29] : memref<1x1xf32, #tpu.memory_space<vmem>>, vector<1x1xf32>
    tpu.vector_store %arg8[%c0_28, %c0_29], %29 {strides = array<i32>} : memref<1x1xf32, #tpu.memory_space<vmem>>, vector<1x1xf32>,
    %c0_i32_30 = arith.constant 0 : i32
    %50 = arith.cmpi eq, %arg2, %c0_i32_30 : i32
    %51 = arith.extui %50 : i1 to i32
    %c0_i32_31 = arith.constant 0 : i32
    %52 = arith.cmpi ne, %51, %c0_i32_31 : i32
    scf.if %52 {
      %c0_32 = arith.constant 0 : index
      %c0_33 = arith.constant 0 : index
      %53 = vector.load %arg10[%c0_32, %c0_33] : memref<8x1xf32, #tpu.memory_space<vmem>>, vector<8x1xf32>
      %c0_34 = arith.constant 0 : index
      %c0_35 = arith.constant 0 : index
      %54 = vector.load %arg8[%c0_34, %c0_35] : memref<1x1xf32, #tpu.memory_space<vmem>>, vector<1x1xf32>
      %c0_36 = arith.constant 0 : index
      %c0_37 = arith.constant 0 : index
      %55 = vector.load %arg9[%c0_36, %c0_37] : memref<1x1xf32, #tpu.memory_space<vmem>>, vector<1x1xf32>
      %56 = tpu.concatenate %53, %54, %55 in 0 : vector<8x1xf32>, vector<1x1xf32>, vector<1x1xf32> -> vector<10x1xf32>
      %c0_38 = arith.constant 0 : index
      %c0_39 = arith.constant 0 : index
      %c0_40 = arith.constant 0 : index
      %c0_41 = arith.constant 0 : index
      %57 = vector.load %arg7[%c0_38, %c0_39, %c0_40, %c0_41] : memref<1x1x10x1xf32, #tpu.memory_space<vmem>>, vector<1x1x10x1xf32>
      %58 = vector.shape_cast %57 : vector<1x1x10x1xf32> to vector<10x1xf32>
      %59 = vector.shape_cast %56 : vector<10x1xf32> to vector<1x1x10x1xf32>
      tpu.vector_store %arg7[%c0_38, %c0_39, %c0_40, %c0_41], %59 {strides = array<i32>} : memref<1x1x10x1xf32, #tpu.memory_space<vmem>>, vector<1x1x10x1xf32>,
    } else {
    }
    return
  }
  func.func @transform_0(%arg0: i32, %arg1: i32, %arg2: i32) -> (i32, i32, i32) {
    %c1_i32 = arith.constant 1 : i32
    %0 = arith.muli %arg1, %c1_i32 : i32
    %1 = arith.addi %0, %arg2 : i32
    %c0_i32 = arith.constant 0 : i32
    %c0_i32_0 = arith.constant 0 : i32
    return %arg0, %c0_i32, %1 : i32, i32, i32
  }
  func.func @transform_1(%arg0: i32, %arg1: i32, %arg2: i32) -> (i32, i32, i32) {
    %c0_i32 = arith.constant 0 : i32
    %c0_i32_0 = arith.constant 0 : i32
    %c0_i32_1 = arith.constant 0 : i32
    return %arg0, %c0_i32, %c0_i32_0 : i32, i32, i32
  }
  func.func @transform_2(%arg0: i32, %arg1: i32, %arg2: i32) -> (i32, i32, i32) {
    %c0_i32 = arith.constant 0 : i32
    %c0_i32_0 = arith.constant 0 : i32
    %c0_i32_1 = arith.constant 0 : i32
    return %arg0, %c0_i32, %c0_i32_0 : i32, i32, i32
  }
  func.func @transform_3(%arg0: i32, %arg1: i32, %arg2: i32) -> i32 {
    %c0_i32 = arith.constant 0 : i32
    %c0_i32_0 = arith.constant 0 : i32
    return %c0_i32 : i32
  }
  func.func @transform_4(%arg0: i32, %arg1: i32, %arg2: i32) -> (i32, i32, i32, i32) {
    %c0_i32 = arith.constant 0 : i32
    %c0_i32_0 = arith.constant 0 : i32
    %c0_i32_1 = arith.constant 0 : i32
    return %arg0, %arg1, %c0_i32, %c0_i32_0 : i32, i32, i32, i32
  }
}

</mosaic_0001>

<bundles_post_ra>
// kernel: tpu_custom_call.1
= control target key start
LH: loop header
LB: loop body
LE: loop exit
PB: predicated region body
PF: predicated region fallthrough
CT: control target
= control target key end

     0   :  { %12 = vsyncpa [#allocation4], 0  ;;  %s1122_s0 = inlined_call_operand.vmem [shape: f32[2,8,256], index: 0, kind: input, shape index: {}]   ;;  %s1123_s1 = inlined_call_operand.vmem [shape: f32[2], index: 1, kind: input, shape index: {}]   ;;  %s1124_s2 = inlined_call_operand.vmem [shape: f32[3,4,8], index: 2, kind: input, shape index: {}]   ;;  %s1125_s3 = inlined_call_operand.vmem [shape: f32[3,4,1], index: 3, kind: input, shape index: {}]   ;;  %s1126_s4 = inlined_call_operand.vmem [shape: f32[1,8], index: 4, kind: input, shape index: {}]   ;;  %s1127_s5 = inlined_call_operand.vmem [shape: f32[8,4], index: 5, kind: input, shape index: {}]   ;;  %s1128_s6 = inlined_call_operand.vmem [shape: f32[3,8,1], index: 6, kind: input, shape index: {}]   ;;  %s1129_s7 = inlined_call_operand.hbm [shape: f32[2,8,256], index: 7, kind: output, shape index: {}]  }
   0x1   :  { %13 = vsyncpa [#allocation3], 0 }
   0x2   :  { %15 = vsyncpa [#allocation3 + $0x1], 0  ;;  %s957_s24 = smov 0   ;;  %s959_s25 = smov 0  }
   0x3   :  { %s961_s26 = smov 0   ;;  %s963_s27 = smov 0  }
   0x4 LB: > { %s978_s28 = sadd.s32 4294967295, %s910_s27   ;;  %s724_s29 = sadd.s32 4294967294, %s910_s27   ;;  %s910_s27 = sphi %s963_s27, %s1135_s27   ;;  %s906_s26 = sphi %s961_s26, %s1134_s26   ;;  %s902_s25 = sphi %s959_s25, %s1133_s25   ;;  %s898_s24 = sphi %s957_s24, %s1132_s24  }
   0x5   : > { %s982_s30 = sadd.s32 1, %s910_s27   ;;  %s180_s8 = sadd.s32 1, %s906_s26 }
   0x6   : > { %s177_s9 = ssub.s32 %s910_s27, %s982_s30  ;;  %p190_p0 = scmp.ne.s32.totalorder %s906_s26, %s902_s25 }
   0x7   : > { %p178_p1 = scmp.eq.s32.totalorder %s177_s9, 0  ;;  %p191_p2 = scmp.eq.s32.totalorder %s978_s28, 1 }
   0x8   : > { %p196_p3 = scmp.ne.s32.totalorder %s902_s25, %s898_s24  ;;  %p197_p4 = scmp.eq.s32.totalorder %s724_s29, 1 }
   0x9   : > { %s993_s10 = scalar_select %p178_p1, %s906_s26, %s180_s8  }
   0xa   : > { %p995_p5 = por %p191_p2, %p190_p0  ;;  %p999_p6 = por %p197_p4, %p196_p3 }
   0xb   : > { %p725_p7 = scmp.ge.s32.totalorder %s910_s27, 1  ;;  %p204_p8 = scmp.lt.s32.totalorder %s910_s27, 3 }
   0xc   : > { %p767_p9 = scmp.eq.s32.totalorder %s978_s28, 0  ;;  %s216_s15 = sshll.u32 %s1123_s1, 4  ;;  %s217_s15 = int_to_ptr.vmem [resolvable:$true] %s216_s15 }
   0xd   : > { %p205_p10 = pnand %p725_p7, %p204_p8  ;;  %s912_s16 = smov [#allocation2]  }
   0xf   : > { %p759_p11 = pneg %p205_p10  ;;  %252 = sbr.rel (%p205_p10) target bundleno = 1316 (0x524), region = 48 }
  0x11   : > { %p760_p12 = pnand %p767_p9, %p759_p11 }
  0x13   : > { %762 = dma.vmem_to_smem (!%p760_p12), %s217_s15, 16, %s912_s16, [#allocation4]  }
  0x14   : > { %889 = dma.done.wait (%p767_p9), [#allocation4], 16  }
  0x15   : > { %891 = vsyncadd (%p767_p9), [#allocation4], 4294967280 }
  0x16   : > { %259 = sfence }
  0x17   : > { %p286_p13 = scmp.lt.s32.totalorder %s978_s28, 1  ;;  %v913_v3 = vmov 256.0   ;;  %v733_v12 = vld [vmem:[%s1124_s2 + $0x4] sm:$0xf]  ;;  %vm308_vm1 = vcmask 64512   ;;  %vm332_vm2 = vcmask 3072  }
  0x18   : > { %811 = vrcp.f32 %v913_v3  ;;  %v734_v13 = vld [vmem:[%s1125_s3 + $0x4] sm:$0xf]  ;;  %v914_v20 = vmov 0   ;;  %v380_v44 = vld [vmem:[%s1125_s3] sm:$0xf]  ;;  %vm372_vm7 = vcmask 60416  }
  0x19   : > { %s287_s17 = scalar_select %p286_p13, %s978_s28, 1  ;;  %807 = vset.pattern.permute.xlu0 %v914_v20  ;;  %808 = vset.pattern.permute.xlu1 %v914_v20  ;;  %v365_v54 = vld [vmem:[%s1124_s2] sm:$0xf]  ;;  %vm393_vm8 = vcmask 1040384   ;;  %vm546_vm14 = vcmask 1043456   ;;  %vm542_vm15 = vcmask 31744  }
  0x1a   : > { %809 = vset.pattern.permute.xlu2 %v914_v20  ;;  %v810_v63 = vld [vmem:[%s1126_s4] ss:$0 sm:$0xff]  ;;  %s752_s20 = sshll.u32 %s978_s28, 4 }
  0x1b   : > { %s751_s18 = sshll.u32 %s287_s17, 4  ;;  %s618_s17 = sld [smem:[#allocation2]] }
  0x1c   : > { %s290_s21 = scalar_lea.vmem %s1122_s0, %s751_s18  ;;  %s738_s18 = sld [smem:[#allocation2 + $0x1]] }
  0x1d   : > { %v1014_v0 = vld [vmem:[%s290_s21] sm:$0xff]  ;;  %v1016_v1 = vld [vmem:[%s290_s21 + $0x8] sm:$0xff]  ;;  %s648_s23 = scalar_lea.hbm %s1129_s7, %s752_s20 }
  0x1e   : > { %v293_v2 = vadd.f32 %v1016_v1, %v1014_v0  ;;  %413 = vmatpush.msra.mxu1 %v1014_v0  ;;  %433 = vmatpush.msra.mxu2 %v1016_v1  ;;  %v812_v4 = vpop.eup %811  ;;  %s652_s9 = sshll.u32 %s648_s23, 4  ;;  %s653_s9 = int_to_ptr.hbm [resolvable:$true] %s652_s9 }
  0x1f   : > { %v297_v5 = vmul.f32 256.0, %v812_v4  ;;  %vm301_vm0 = vweird.f32 %v812_v4  ;;  %s858_s13 = sshra.s32 %s653_s9, 4  ;;  %s859_s13 = int_to_ptr.hbm [resolvable:$true] %s858_s13 }
  0x20   : > { %294 = vadd.xlane.f32.xlu0 %v293_v2  ;;  %s860_s14 = scalar_lea.hbm %s859_s13, 16  ;;  %p865_p3 = scmp.lt.s32.totalorder %s859_s13, %s1129_s7 }
  0x21   : > { %v298_v6 = vsub.f32 1.0, %v297_v5  ;;  %p861_p0 = scmp.ne.s32.totalorder %s859_s13, %s860_s14 }
  0x23   : > { %v299_v7 = vmul.f32 %v812_v4, %v298_v6  ;;  %p862_p1 = pnand %p861_p0, %p995_p5 }
  0x25   : > { %v300_v8 = vadd.f32 %v812_v4, %v299_v7  ;;  %p863_p2 = pneg %p862_p1 }
  0x27   : > { %v302_v9 = vsel %vm301_vm0, %v812_v4, %v300_v8  ;;  %v915_v4 = vmov 6.0   ;;  %vm570_vm0 = vcmask 7168  }
  0x93   : > { %v295_v10 = vpop.xlane.xlu0 %294 }
  0x94   : > { %v303_v11 = vmul.f32 %v302_v9, %v295_v10 }
  0x96   : > { %327 = vmatpush.msra.mxu0 %v303_v11 }
  0x97   : > { %735 = vmatmul.msk.f32.vlgmr.msra.gmra.mxu0 %vm308_vm1, %v733_v12 }
 0x114   : > { %v329_v14 = vpop.f32.mrf.mxu0 }
 0x115   : > { %v330_v15 = vadd.f32 %v734_v13, %v329_v14 }
 0x117   : > { %v333_v16 = vsel %vm332_vm2, %v330_v15, -inf }
 0x118   : > { %v334_v17 = vrot.slane %v333_v16, 4 }
 0x11a   : > { %v335_v18 = vmax.f32 %v333_v16, %v334_v17 }
 0x11c   : > { %v336_v19 = vrot.slane %v335_v18, 2 }
 0x11e   : > { %v337_v21 = vmax.f32 %v335_v18, %v336_v19 }
 0x120   : > { %v338_v22 = vrot.slane %v337_v21, 1 }
 0x122   : > { %v339_v23 = vmax.f32 %v337_v21, %v338_v22 }
 0x124   : > { %v340_v24 = vsub.f32 %v330_v15, %v339_v23 }
 0x126   : > { %v341_v25 = vmul.f32 1.442695, %v340_v24 }
 0x128   : > { %813 = vpow2.f32 %v341_v25  ;;  %v469_v25 = vstv %s738_s18  ;;  %s283_s18 = sand.u32 1, %s902_s25  }
 0x129   : > { %s730_s19 = sshll.u32 %s283_s18, 4  ;;  %s637_s28 = scalar_lea.sflag [#allocation3], %s283_s18 }
 0x12a   : > { %s285_s29 = scalar_lea.vmem [#allocation5], %s730_s19 }
 0x12b   : > { %s650_s8 = sshll.u32 %s285_s29, 4  ;;  %s651_s8 = int_to_ptr.vmem [resolvable:$true] %s650_s8 }
 0x12e   : > { %v814_v26 = vpop.eup %813 }
 0x12f   : > { %v343_v27 = vsel %vm332_vm2, %v814_v26, 0.0 }
 0x130   : > { %v344_v28 = vrot.slane %v343_v27, 4 }
 0x132   : > { %v345_v29 = vadd.f32 %v344_v28, %v343_v27 }
 0x134   : > { %v346_v30 = vrot.slane %v345_v29, 2 }
 0x136   : > { %v347_v31 = vadd.f32 %v346_v30, %v345_v29 }
 0x138   : > { %v348_v32 = vrot.slane %v347_v31, 1 }
 0x13a   : > { %v349_v33 = vadd.f32 %v348_v32, %v347_v31 }
 0x13c   : > { %815 = vrcp.f32 %v349_v33  ;;  %v361_v37 = vand.u32 2147483648, %v349_v33  ;;  %v359_v39 = vand.u32 2147483647, %v349_v33  ;;  %vm355_vm4 = vweird.f32 %v349_v33 }
 0x13d   : > { %817 = vrcp.f32 %v915_v4  ;;  %v740_v4 = vld [vmem:[%s1125_s3 + $0x8] sm:$0xf] }
 0x13e   : > { %v362_v41 = vor.u32 1.1754944e-38, %v361_v37  ;;  %vm360_vm6 = vcmp.eq.f32.partialorder %v359_v39, 8.507059e+37 }
 0x142   : > { %v816_v34 = vpop.eup %815 }
 0x143   : > { %v351_v35 = vmul.f32 %v816_v34, %v349_v33  ;;  %vm356_vm3 = vweird.f32 %v816_v34  ;;  %v818_v5 = vpop.eup %817 }
 0x144   : > { %vm357_vm5 = vmor %vm355_vm4, %vm356_vm3  ;;  %v446_v6 = vmul.f32 6.0, %v818_v5  ;;  %vm450_vm9 = vweird.f32 %v818_v5 }
 0x145   : > { %v352_v36 = vsub.f32 1.0, %v351_v35 }
 0x146   : > { %v447_v7 = vsub.f32 1.0, %v446_v6 }
 0x147   : > { %v353_v38 = vmul.f32 %v816_v34, %v352_v36 }
 0x148   : > { %v448_v8 = vmul.f32 %v818_v5, %v447_v7  ;;  %v540_v7 = vld [vmem:[%s1127_s5] sm:$0xff] }
 0x149   : > { %v354_v40 = vadd.f32 %v816_v34, %v353_v38 }
 0x14a   : > { %v449_v9 = vadd.f32 %v818_v5, %v448_v8  ;;  %v916_v8 = vmov 8.0  }
 0x14b   : > { %v358_v42 = vsel %vm357_vm5, %v816_v34, %v354_v40 }
 0x14c   : > { %v363_v43 = vsel %vm360_vm6, %v362_v41, %v358_v42  ;;  %v1044_v12 = vsel %vm450_vm9, %v818_v5, %v449_v9 }
 0x14d   : > { %v364_v45 = vmul.f32 %v814_v26, %v363_v43 }
 0x14f   : > { %368 = vperm.xlu0 %807, %v364_v45   ;;  %v381_v46 = vmul.f32 %v380_v44, %v364_v45 }
 0x151   : > { %v382_v47 = vsel %vm332_vm2, %v381_v46, 0.0 }
 0x152   : > { %v383_v48 = vrot.slane %v382_v47, 4 }
 0x154   : > { %v384_v49 = vadd.f32 %v383_v48, %v382_v47 }
 0x156   : > { %v385_v50 = vrot.slane %v384_v49, 2 }
 0x158   : > { %v386_v51 = vadd.f32 %v385_v50, %v384_v49 }
 0x15a   : > { %v387_v52 = vrot.slane %v386_v51, 1 }
 0x15c   : > { %v388_v53 = vadd.f32 %v387_v52, %v386_v51 }
 0x15e   : > { %440 = vperm.xlu1 %808, %v388_v53  }
 0x1c1   : > { %v369_v55 = vpop.permute.xlu0 %368 }
 0x1c2   : > { %v371_v56 = vmul.f32 %v369_v55, %v365_v54 }
 0x1c4   : > { %v373_v57 = vsel %vm372_vm7, %v371_v56, 0.0 }
 0x1c5   : > { %v374_v58 = vrot.slane %v373_v57, 4 }
 0x1c7   : > { %v375_v59 = vadd.f32 %v374_v58, %v373_v57 }
 0x1c9   : > { %v376_v60 = vrot.slane %v375_v59, 2 }
 0x1cb   : > { %v377_v61 = vadd.f32 %v376_v60, %v375_v59 }
 0x1cd   : > { %v378_v62 = vrot.slane %v377_v61, 1 }
 0x1cf   : > { %v379_v2 = vadd.f32 %v378_v62, %v377_v61 }
 0x1d0   : > { %v441_v10 = vpop.permute.xlu1 %440 }
 0x1d1   : > { %v394_v3 = vsel %vm393_vm8, %v379_v2, %v810_v63 }
 0x1d2   : > { %736 = vmatmul.msk.f32.vlgmr.msra.gmra.mxu1 %vm308_vm1, %v394_v3  ;;  %737 = vmatmul.msk.f32.vlgmr.msra.gmra.mxu2 %vm308_vm1, %v394_v3  ;;  %v739_v3 = vld [vmem:[%s1124_s2 + $0x8] sm:$0xf] }
 0x24f   : > { %v415_v11 = vpop.f32.mrf.mxu1 }
 0x250   : > { %v443_v13 = vadd.f32 %v441_v10, %v415_v11  ;;  %v462_v21 = vrot.slane %v415_v11, 1  ;;  %v541_v11 = vld [vmem:[%s1128_s6] sm:$0xff] }
 0x252   : > { %v452_v14 = vmul.f32 %v1044_v12, %v443_v13 }
 0x254   : > { %v454_v15 = vadd.f32 0.5, %v452_v14 }
 0x255   : > { %v435_v16 = vpop.f32.mrf.mxu2 }
 0x256   : > { %v456_v17 = vmax.f32 %v454_v15, 0.0  ;;  %v444_v18 = vadd.f32 %v441_v10, %v435_v16  ;;  %v463_v27 = vrot.slane %v435_v16, 1 }
 0x258   : > { %v1047_v19 = vmin.f32 %v456_v17, 1.0  ;;  %v453_v20 = vmul.f32 %v1044_v12, %v444_v18 }
 0x25a   : > { %v455_v22 = vadd.f32 0.5, %v453_v20  ;;  %v466_v23 = vmul.f32 %v462_v21, %v1047_v19 }
 0x25c   : > { %v457_v24 = vmax.f32 %v455_v22, 0.0  ;;  %v470_v29 = vadd.f32 %v469_v25, %v466_v23 }
 0x25e   : > { %v1051_v26 = vmin.f32 %v457_v24, 1.0  ;;  %v472_v31 = vsel %vm393_vm8, %v470_v29, -inf }
 0x260   : > { %v467_v28 = vmul.f32 %v463_v27, %v1051_v26 }
 0x262   : > { %v471_v30 = vadd.f32 %v469_v25, %v467_v28 }
 0x264   : > { %v473_v32 = vsel %vm393_vm8, %v471_v30, -inf }
 0x265   : > { %v474_v33 = vmax.f32 %v472_v31, %v473_v32 }
 0x267   : > { %475 = vmax.xlane.f32.xlu1 %v474_v33 }
 0x2da   : > { %v476_v34 = vpop.xlane.xlu1 %475 }
 0x2db   : > { %v477_v35 = vsub.f32 %v470_v29, %v476_v34  ;;  %v478_v36 = vsub.f32 %v471_v30, %v476_v34 }
 0x2dd   : > { %v479_v37 = vmul.f32 1.442695, %v477_v35  ;;  %v481_v38 = vmul.f32 1.442695, %v478_v36 }
 0x2df   : > { %819 = vpow2.f32 %v479_v37 }
 0x2e0   : > { %821 = vpow2.f32 %v481_v38 }
 0x2e5   : > { %v820_v39 = vpop.eup %819 }
 0x2e6   : > { %v822_v40 = vpop.eup %821  ;;  %v483_v41 = vsel %vm393_vm8, %v820_v39, 0.0  ;;  %v502_v42 = vmul.f32 %v820_v39, %v1047_v19 }
 0x2e7   : > { %v484_v43 = vsel %vm393_vm8, %v822_v40, 0.0  ;;  %v503_v44 = vmul.f32 %v822_v40, %v1051_v26 }
 0x2e8   : > { %v485_v45 = vadd.f32 %v484_v43, %v483_v41  ;;  %v504_v46 = vperm.slane %v502_v42, 0 }
 0x2e9   : > { %v505_v47 = vperm.slane %v503_v44, 0 }
 0x2ea   : > { %486 = vadd.xlane.f32.xlu2 %v485_v45  ;;  %v506_v48 = vmul.f32 %v504_v46, %v1014_v0 }
 0x2eb   : > { %v507_v49 = vmul.f32 %v505_v47, %v1016_v1  ;;  %v744_v47 = vld [vmem:[%s1128_s6 + $0x8] sm:$0xff] }
 0x2ed   : > { %v508_v50 = vadd.f32 %v507_v49, %v506_v48  ;;  %v745_v49 = vld [vmem:[%s1128_s6 + $0x10] sm:$0xff] }
 0x2f2   : > { %509 = vadd.xlane.f32.xlu2 %v508_v50 }
 0x35d   : > { %v487_v51 = vpop.xlane.xlu2 %486 }
 0x35e   : > { %823 = vrcp.f32 %v487_v51  ;;  %v499_v55 = vand.u32 2147483648, %v487_v51  ;;  %v497_v57 = vand.u32 2147483647, %v487_v51  ;;  %vm493_vm11 = vweird.f32 %v487_v51 }
 0x35f   : > { %825 = vrcp.f32 %v916_v8 }
 0x360   : > { %v500_v59 = vor.u32 1.1754944e-38, %v499_v55  ;;  %vm498_vm13 = vcmp.eq.f32.partialorder %v497_v57, 8.507059e+37  ;;  %v619_v55 = vstv %s618_s17  ;;  %s864_s17 = scalar_lea.hbm %s1129_s7, 32 }
 0x361   : > { %p866_p4 = scmp.lt.s32.totalorder %s864_s17, %s860_s14 }
 0x363   : > { %p867_p7 = por %p866_p4, %p865_p3 }
 0x364   : > { %v824_v52 = vpop.eup %823 }
 0x365   : > { %v489_v53 = vmul.f32 %v824_v52, %v487_v51  ;;  %vm494_vm10 = vweird.f32 %v824_v52  ;;  %v510_v63 = vpop.xlane.xlu2 %509  ;;  %v826_v9 = vpop.eup %825  ;;  %p868_p8 = pnand %p867_p7, %p863_p2 }
 0x366   : > { %vm495_vm12 = vmor %vm493_vm11, %vm494_vm10  ;;  %v579_v10 = vmul.f32 8.0, %v826_v9 }
 0x367   : > { %v490_v54 = vsub.f32 1.0, %v489_v53 }
 0x368   : > { %v580_v15 = vsub.f32 1.0, %v579_v10 }
 0x369   : > { %v491_v56 = vmul.f32 %v824_v52, %v490_v54 }
 0x36a   : > { %v581_v18 = vmul.f32 %v826_v9, %v580_v15 }
 0x36b   : > { %v492_v58 = vadd.f32 %v824_v52, %v491_v56 }
 0x36c   : > { %v582_v22 = vadd.f32 %v826_v9, %v581_v18 }
 0x36d   : > { %v496_v60 = vsel %vm495_vm12, %v824_v52, %v492_v58  ;;  %v621_v58 = vperm.slane %v1047_v19, 0 }
 0x36e   : > { %v501_v61 = vsel %vm498_vm13, %v500_v59, %v496_v60  ;;  %v622_v59 = vperm.slane %v1051_v26, 0 }
 0x36f   : > { %v511_v62 = vperm.slane %v501_v61, 0  ;;  %v623_v60 = vmul.f32 %v621_v58, %v1014_v0 }
 0x371   : > { %v512_v2 = vmul.f32 %v511_v62, %v510_v63 }
 0x373   : > { %535 = vmatpush.msra.mxu3 %v512_v2 }
 0x374   : > { %741 = vmatmul.msk.f32.vlgmr.msra.gmra.mxu3 %vm308_vm1, %v739_v3  ;;  %vm583_vm1 = vweird.f32 %v826_v9 }
 0x375   : > { %v584_v25 = vsel %vm583_vm1, %v826_v9, %v582_v22 }
 0x3f7   : > { %v537_v5 = vpop.f32.mrf.mxu3 }
 0x3f8   : > { %v538_v6 = vadd.f32 %v740_v4, %v537_v5 }
 0x3fa   : > { %742 = vmatpush.msk.msrb.mxu0 %vm546_vm14, %v538_v6 }
 0x3fb   : > { %743 = vmatmul.msk.f32.vlgmr.msrb.gmra.mxu0 %vm542_vm15, %v540_v7 }
 0x478   : > { %v567_v13 = vpop.f32.mrf.mxu0 }
 0x479   : > { %v568_v14 = vadd.f32 %v567_v13, %v541_v11 }
 0x47b   : > { %v571_v16 = vsel %vm570_vm0, %v568_v14, 0.0 }
 0x47c   : > { %v572_v17 = vrot.slane %v571_v16, 4 }
 0x47e   : > { %v573_v20 = vadd.f32 %v572_v17, %v571_v16 }
 0x480   : > { %v574_v21 = vrot.slane %v573_v20, 2 }
 0x482   : > { %v575_v23 = vadd.f32 %v574_v21, %v573_v20 }
 0x484   : > { %v576_v24 = vrot.slane %v575_v23, 1 }
 0x486   : > { %v577_v27 = vadd.f32 %v576_v24, %v575_v23 }
 0x488   : > { %v585_v28 = vmul.f32 %v584_v25, %v577_v27 }
 0x48a   : > { %v586_v29 = vsub.f32 %v568_v14, %v585_v28 }
 0x48c   : > { %v587_v30 = vmul.f32 %v586_v29, %v586_v29 }
 0x48e   : > { %v588_v31 = vsel %vm570_vm0, %v587_v30, 0.0 }
 0x48f   : > { %v589_v32 = vrot.slane %v588_v31, 4 }
 0x491   : > { %v590_v33 = vadd.f32 %v589_v32, %v588_v31 }
 0x493   : > { %v591_v34 = vrot.slane %v590_v33, 2 }
 0x495   : > { %v592_v35 = vadd.f32 %v591_v34, %v590_v33 }
 0x497   : > { %v593_v36 = vrot.slane %v592_v35, 1 }
 0x499   : > { %v594_v37 = vadd.f32 %v593_v36, %v592_v35 }
 0x49b   : > { %v595_v38 = vmul.f32 %v594_v37, %v584_v25 }
 0x49d   : > { %v596_v39 = vadd.f32 1e-05, %v595_v38 }
 0x49f   : > { %827 = vrsqrt.f32 %v596_v39  ;;  %vm603_vm3 = vweird.f32 %v596_v39 }
 0x4a5   : > { %v828_v40 = vpop.eup %827 }
 0x4a6   : > { %v598_v41 = vmul.f32 %v828_v40, %v596_v39  ;;  %vm604_vm2 = vweird.f32 %v828_v40 }
 0x4a7   : > { %vm605_vm4 = vmor %vm603_vm3, %vm604_vm2 }
 0x4a8   : > { %v599_v42 = vmul.f32 %v828_v40, %v598_v41 }
 0x4aa   : > { %v600_v43 = vmul.f32 0.5, %v599_v42 }
 0x4ac   : > { %v601_v44 = vsub.f32 1.5, %v600_v43 }
 0x4ae   : > { %v602_v45 = vmul.f32 %v828_v40, %v601_v44 }
 0x4b0   : > { %v606_v46 = vsel %vm605_vm4, %v828_v40, %v602_v45 }
 0x4b1   : > { %v607_v48 = vmul.f32 %v606_v46, %v586_v29 }
 0x4b3   : > { %v610_v50 = vmul.f32 %v744_v47, %v607_v48 }
 0x4b5   : > { %v613_v51 = vadd.f32 %v745_v49, %v610_v50 }
 0x4b7   : > { %v614_v52 = vmul.f32 %v613_v51, %v1044_v12  ;;  %v624_v12 = vmul.f32 %v622_v59, %v1016_v1 }
 0x4b9   : > { %v615_v53 = vadd.f32 0.5, %v614_v52 }
 0x4bb   : > { %v616_v54 = vmax.f32 %v615_v53, 0.0 }
 0x4bd   : > { %v617_v56 = vmin.f32 %v616_v54, 1.0 }
 0x4bf   : > { %v620_v57 = vmul.f32 %v619_v55, %v617_v56 }
 0x4c1   : > { %627 = vperm.xlu2 %809, %v620_v57  }
 0x51b   : > { %v628_v61 = vpop.permute.xlu2 %627 }
 0x51c   : > { %v630_v62 = vmul.f32 %v628_v61, %v623_v60  ;;  %v631_v63 = vmul.f32 %v628_v61, %v624_v12 }
 0x51e   : > { %v632_v19 = vadd.f32 %v630_v62, %v1014_v0  ;;  %v633_v26 = vadd.f32 %v631_v63, %v1016_v1 }
 0x520   : > { %634 = vst [vmem:[%s285_s29] sm:$0xff] %v632_v19 }
 0x521   : > { %635 = vst [vmem:[%s285_s29 + $0x8] sm:$0xff] %v633_v26 }
 0x522   : > { %871 = shalt.err (!%p868_p8)
}
 0x523   : > { %757 = dma.vmem_to_hbm [thread:$0]  (%p995_p5), %s651_s8, 256, %s653_s9, %s637_s28  }
 0x524 PF: > { %p769_p9 = scmp.ge.s32.totalorder %s910_s27, 2  ;;  %s664_s18 = sand.u32 1, %s898_s24  }
 0x525   : > { %s665_s21 = scalar_lea.sflag [#allocation3], %s664_s18 }
 0x526   : > { %p764_p10 = pnand %p769_p9, %p999_p6 }
 0x528   : > { %p765_p11 = pneg %p764_p10 }
 0x52a   : > { %893 = dma.done.wait (%p765_p11), %s665_s21, 256  }
 0x52b   : > { %895 = vsyncadd (%p765_p11), %s665_s21, 4294967040  ;;  %p18_p12 = scmp.ge.s32.totalorder %s982_s30, 4   ;;  %s1132_s24 = smov %s902_s25 }
 0x52c   : > { %s1133_s25 = smov %s906_s26  ;;  %s1134_s26 = smov %s993_s10 }
 0x52d   : > { %s1135_s27 = smov %s982_s30  ;;  %20 = sbr.rel (!%p18_p12) target bundleno = 4 (0x4), region = 94 }
 0x532   :  { %671 = vsyncpa [#allocation3], 1 }
 0x533   :  { %673 = vsyncpa [#allocation3 + $0x1], 1 }
 0x534   :  { %674 = vsyncpa [#allocation4], 1 }
 0x535   :  { %676 = vsyncpa [#allocation4 + $0x1], 1 }

// kernel: tpu_custom_call.1
= control target key start
LH: loop header
LB: loop body
LE: loop exit
PB: predicated region body
PF: predicated region fallthrough
CT: control target
= control target key end

     0   :  { %s1041_s0 = inlined_call_operand.hbm [shape: f32[2,8,256], index: 0, kind: input, shape index: {}]   ;;  %s1042_s1 = inlined_call_operand.hbm [shape: f32[2,2,8], index: 1, kind: input, shape index: {}]   ;;  %s1043_s2 = inlined_call_operand.vmem [shape: f32[2,1,1], index: 2, kind: input, shape index: {}]   ;;  %s1044_s3 = inlined_call_operand.vmem [shape: f32[2], index: 3, kind: input, shape index: {}]   ;;  %s1045_s4 = inlined_call_operand.vmem [shape: f32[2,1,10,1], index: 4, kind: output, shape index: {}]  }
   0x1   :  { %1047 = sst [smem:[#allocation15_spill]] %s1044_s3 }
   0x2   :  { %9 = vsyncpa [#allocation6], 0 }
   0x3   :  { %11 = vsyncpa [#allocation6 + $0x1], 0 }
   0x4   :  { %12 = vsyncpa [#allocation9], 0 }
   0x5   :  { %14 = vsyncpa [#allocation9 + $0x1], 0 }
   0x6   :  { %15 = vsyncpa [#allocation7], 0  ;;  %s899_s15 = smov 0   ;;  %s901_s16 = smov 0  }
   0x7   :  { %s903_s17 = smov 0   ;;  %s905_s18 = smov 0  }
   0x8   :  { %s907_s19 = smov 0   ;;  %s909_s20 = smov 0  }
   0x9 LB: > { %s625_s21 = sadd.s32 4294967295, %s867_s20   ;;  %p64_p0 = scmp.ne.s32.totalorder %s851_s16, %s847_s15  ;;  %s867_s20 = sphi %s909_s20, %s21_s20   ;;  %s863_s19 = sphi %s907_s19, %s1058_s19   ;;  %s859_s18 = sphi %s905_s18, %s1057_s18   ;;  %s855_s17 = sphi %s903_s17, %s1056_s17   ;;  %s851_s16 = sphi %s901_s16, %s1055_s16   ;;  %s847_s15 = sphi %s899_s15, %s1054_s15  }
   0xa   : > { %p929_p1 = scmp.eq.s32.totalorder %s625_s21, 0  ;;  %p627_p2 = scmp.ge.s32.totalorder %s867_s20, 1 }
   0xb   : > { %p176_p3 = scmp.lt.s32.totalorder %s867_s20, 3  ;;  %s1050_s3 = sld [smem:[#allocation15_spill]] }
   0xc   : > { %p937_p4 = por %p929_p1, %p64_p0  ;;  %s40_s28 = sadd.s32 1, %s863_s19 }
   0xd   : > { %p944_p5 = pnand %p627_p2, %p176_p3  ;;  %s51_s29 = sadd.s32 1, %s855_s17 }
   0xe   : > { %p42_p8 = scmp.ge.s32.totalorder %s40_s28, 2  ;;  %s869_s30 = smov [#allocation10]  }
   0xf   : > { %p656_p6 = pneg %p944_p5  ;;  %p58_p9 = scmp.ne.s32.totalorder %s855_s17, %s851_s16 }
  0x10   : > { %s1060_s28 = smov (%p42_p8, %s40_s28), 0  ;;  %p59_p10 = scmp.eq.s32.totalorder %s867_s20, 0 }
  0x11   : > { %s188_s26 = sshll.u32 %s1050_s3, 4  ;;  %p657_p7 = pnand %p656_p6, %p929_p1  ;;  %s189_s26 = int_to_ptr.vmem [resolvable:$true] %s188_s26 }
  0x12   : > { %1052 = sst [smem:[#allocation14_spill]] %s1060_s28  ;;  %s46_s5 = ssub.s32 %s863_s19, %s1060_s28 }
  0x13   : > { %659 = dma.vmem_to_smem (!%p657_p7), %s189_s26, 16, %s869_s30, [#allocation7]  }
  0x14   : > { %p668_p11 = scmp.lt.s32.totalorder %s867_s20, 2  ;;  %p49_p12 = scmp.eq.s32.totalorder %s46_s5, 0 }
  0x15   : > { %p60_p13 = por %p59_p10, %p58_p9  ;;  %s199_s6 = sand.u32 1, %s855_s17  }
  0x16   : > { %s646_s7 = sshll.u32 %s863_s19, 4  ;;  %s630_s9 = sshll.u32 %s199_s6, 4 }
  0x17   : > { %s965_s8 = scalar_select %p49_p12, %s855_s17, %s51_s29  }
  0x18   : > { %s211_s12 = scalar_lea.hbm %s1041_s0, %s646_s7  ;;  %s203_s14 = scalar_lea.vmem [#allocation5], %s630_s9 }
  0x19   : > { %s213_s13 = sshll.u32 %s211_s12, 4  ;;  %s215_s15 = sshll.u32 %s203_s14, 4  ;;  %s214_s13 = int_to_ptr.hbm [resolvable:$true] %s213_s13  ;;  %s216_s15 = int_to_ptr.vmem [resolvable:$true] %s215_s15 }
  0x1a   : > { %p661_p0 = pnand %p668_p11, %p60_p13  ;;  %s633_s21 = sshll.u32 %s199_s6, 1 }
  0x1b   : > { %s634_s24 = sshll.u32 %s863_s19, 1  ;;  %s200_s25 = scalar_lea.sflag [#allocation6], %s199_s6 }
  0x1c   : > { %663 = dma.hbm_to_vmem [thread:$0]  (!%p661_p0), %s214_s13, 256, %s216_s15, %s200_s25  }
  0x1d   : > { %s230_s29 = scalar_lea.hbm %s1042_s1, %s634_s24  ;;  %s226_s5 = scalar_lea.vmem [#allocation8], %s633_s21 }
  0x1e   : > { %s234_s3 = sshll.u32 %s226_s5, 4  ;;  %s232_s28 = sshll.u32 %s230_s29, 4  ;;  %s235_s3 = int_to_ptr.vmem [resolvable:$true] %s234_s3  ;;  %s233_s28 = int_to_ptr.hbm [resolvable:$true] %s232_s28 }
  0x1f   : > { %s223_s7 = scalar_lea.sflag [#allocation9], %s199_s6  ;;  %249 = sbr.rel (%p944_p5) target bundleno = 571 (0x23b), region = 36 }
  0x20   : > { %666 = dma.hbm_to_vmem [thread:$0]  (!%p661_p0), %s233_s28, 32, %s235_s3, %s223_s7  }
  0x21   : > { %s251_s9 = sand.u32 (!%p944_p5), 1, %s851_s16  }
  0x22   : > { %s636_s10 = sshll.u32 (!%p944_p5), %s251_s9, 4  ;;  %s252_s11 = scalar_lea.sflag (!%p944_p5), [#allocation6], %s251_s9 }
  0x23   : > { %s255_s12 = scalar_lea.vmem (!%p944_p5), [#allocation5], %s636_s10 }
  0x24   : > { %834 = dma.done.wait (%p937_p4), %s252_s11, 256  }
  0x25   : > { %836 = vsyncadd (%p937_p4), %s252_s11, 4294967040  ;;  %s637_s13 = sshll.u32 %s251_s9, 1  ;;  %s262_s14 = scalar_lea.sflag [#allocation9], %s251_s9 }
  0x26   : > { %s265_s15 = scalar_lea.vmem [#allocation8], %s637_s13 }
  0x27   : > { %838 = dma.done.wait (%p937_p4), %s262_s14, 32  }
  0x28   : > { %840 = vsyncadd (%p937_p4), %s262_s14, 4294967264 }
  0x29   : > { %842 = dma.done.wait (%p929_p1), [#allocation7], 16  }
  0x2a   : > { %844 = vsyncadd (%p929_p1), [#allocation7], 4294967280 }
  0x2b   : > { %276 = sfence }
  0x2c   : > { %v991_v0 = vld [vmem:[%s255_s12] sm:$0xff]  ;;  %v993_v1 = vld [vmem:[%s255_s12 + $0x8] sm:$0xff]  ;;  %vm335_vm0 = vcmask 64512   ;;  %p311_p2 = scmp.lt.s32.totalorder %s859_s18, 1  ;;  %v870_v3 = vmov 0   ;;  %v871_v5 = vmov 6.0  }
  0x2d   : > { %v334_v2 = vld [vmem:[%s265_s15] sm:$0x3]  ;;  %354 = vmatpush.msra.mxu0 %v991_v0  ;;  %374 = vmatpush.msra.mxu1 %v993_v1  ;;  %726 = vrcp.f32 %v871_v5  ;;  %vm327_vm1 = vcmask 0   ;;  %v872_v8 = vmov -inf   ;;  %s643_s27 = sld [smem:[#allocation10 + $0x1]]  ;;  %vm416_vm3 = vcmask 1040384  }
  0x2e   : > { %641 = vmatmul.msk.f32.vlgmr.msra.gmra.mxu0 %vm335_vm0, %v334_v2  ;;  %642 = vmatmul.msk.f32.vlgmr.msra.gmra.mxu1 %vm335_vm0, %v334_v2  ;;  %s1062_s18 = smov (!%p311_p2, %s859_s18), 1  ;;  %328 = vst.msk [vmem:[#allocation2] sm:$0x1] %vm327_vm1, %v872_v8  ;;  %v873_v37 = vmov 0.0   ;;  %vm330_vm4 = vcmask 7168   ;;  %vm477_vm5 = vcmask 1024  }
  0x2f   : > { %723 = vset.pattern.permute.xlu0 %v870_v3  ;;  %724 = vset.pattern.permute.xlu1 %v870_v3  ;;  %s313_s23 = scalar_lea.vmem %s1043_s2, %s1062_s18  ;;  %329 = vst.msk [vmem:[#allocation3] sm:$0x1] %vm327_vm1, %v873_v37  ;;  %s647_s28 = sshll.u32 %s1062_s18, 4 }
  0x30   : > { %v379_v4 = vld [vmem:[%s313_s23] sm:$0x1]  ;;  %331 = vst.msk [vmem:[#allocation4] sm:$0xff] %vm330_vm4, %v873_v37  ;;  %s322_s24 = scalar_lea.vmem %s1045_s4, %s647_s28 }
  0x31   : > { %382 = vperm.xlu0 %723, %v379_v4  }
  0x33   : > { %v727_v6 = vpop.eup %726  ;;  %v412_v29 = vstv %s643_s27 }
  0x34   : > { %v389_v7 = vmul.f32 6.0, %v727_v6  ;;  %vm393_vm2 = vweird.f32 %v727_v6 }
  0x35   : > { %v415_v38 = vld [vmem:[#allocation2] sm:$0x1] }
  0x36   : > { %v390_v9 = vsub.f32 1.0, %v389_v7  ;;  %v438_v62 = vld [vmem:[#allocation3] sm:$0x1] }
  0x37   : > { %v450_v5 = vld [vmem:[#allocation4] sm:$0xff] }
  0x38   : > { %v391_v10 = vmul.f32 %v727_v6, %v390_v9 }
  0x3a   : > { %v392_v12 = vadd.f32 %v727_v6, %v391_v10 }
  0x3c   : > { %v394_v15 = vsel %vm393_vm2, %v727_v6, %v392_v12 }
  0xa3   : > { %v383_v11 = vpop.permute.xlu0 %382 }
  0xa4   : > { %v385_v13 = vperm.slane %v383_v11, 0 }
  0xab   : > { %v356_v14 = vpop.f32.mrf.mxu0  ;;  %v376_v16 = vpop.f32.mrf.mxu1 }
  0xac   : > { %v386_v17 = vadd.f32 %v385_v13, %v356_v14  ;;  %v387_v18 = vadd.f32 %v385_v13, %v376_v16  ;;  %v405_v26 = vrot.slane %v356_v14, 1  ;;  %v406_v28 = vrot.slane %v376_v16, 1 }
  0xae   : > { %v395_v19 = vmul.f32 %v394_v15, %v386_v17  ;;  %v396_v20 = vmul.f32 %v394_v15, %v387_v18 }
  0xb0   : > { %v397_v21 = vadd.f32 0.5, %v395_v19  ;;  %v398_v22 = vadd.f32 0.5, %v396_v20 }
  0xb2   : > { %v399_v23 = vmax.f32 %v397_v21, 0.0  ;;  %v400_v24 = vmax.f32 %v398_v22, 0.0 }
  0xb4   : > { %v401_v25 = vmin.f32 %v399_v23, 1.0  ;;  %v402_v27 = vmin.f32 %v400_v24, 1.0 }
  0xb6   : > { %v409_v30 = vmul.f32 %v405_v26, %v401_v25  ;;  %v410_v31 = vmul.f32 %v406_v28, %v402_v27 }
  0xb8   : > { %v413_v32 = vadd.f32 %v412_v29, %v409_v30  ;;  %v414_v33 = vadd.f32 %v412_v29, %v410_v31 }
  0xba   : > { %v417_v34 = vsel %vm416_vm3, %v413_v32, -inf  ;;  %v418_v35 = vsel %vm416_vm3, %v414_v33, -inf }
  0xbb   : > { %v419_v36 = vmax.f32 %v417_v34, %v418_v35 }
  0xbd   : > { %420 = vmax.xlane.f32.xlu0 %v419_v36 }
 0x130   : > { %v421_v39 = vpop.xlane.xlu0 %420 }
 0x131   : > { %v422_v40 = vmax.f32 %v415_v38, %v421_v39 }
 0x133   : > { %v423_v41 = vsub.f32 %v415_v38, %v422_v40  ;;  %465 = vst.msk [vmem:[#allocation2] sm:$0x1] %vm327_vm1, %v422_v40  ;;  %428 = vperm.xlu1 %724, %v422_v40  }
 0x135   : > { %v424_v60 = vmul.f32 1.442695, %v423_v41 }
 0x1a5   : > { %v429_v42 = vpop.permute.xlu1 %428 }
 0x1a6   : > { %v431_v43 = vperm.slane %v429_v42, 0 }
 0x1a8   : > { %v432_v44 = vsub.f32 %v413_v32, %v431_v43  ;;  %v433_v45 = vsub.f32 %v414_v33, %v431_v43 }
 0x1aa   : > { %v434_v46 = vmul.f32 1.442695, %v432_v44  ;;  %v436_v47 = vmul.f32 1.442695, %v433_v45 }
 0x1ac   : > { %728 = vpow2.f32 %v434_v46 }
 0x1ad   : > { %730 = vpow2.f32 %v436_v47 }
 0x1ae   : > { %732 = vpow2.f32 %v424_v60 }
 0x1b2   : > { %v729_v48 = vpop.eup %728 }
 0x1b3   : > { %v731_v49 = vpop.eup %730  ;;  %v440_v50 = vsel %vm416_vm3, %v729_v48, 0.0  ;;  %v448_v51 = vmul.f32 %v729_v48, %v401_v25 }
 0x1b4   : > { %v441_v52 = vsel %vm416_vm3, %v731_v49, 0.0  ;;  %v449_v53 = vmul.f32 %v731_v49, %v402_v27  ;;  %v733_v61 = vpop.eup %732 }
 0x1b5   : > { %v442_v54 = vadd.f32 %v441_v52, %v440_v50  ;;  %v455_v55 = vperm.slane %v448_v51, 0  ;;  %v439_v63 = vmul.f32 %v733_v61, %v438_v62  ;;  %v452_v3 = vperm.slane %v733_v61, 0 }
 0x1b6   : > { %v456_v56 = vperm.slane %v449_v53, 0 }
 0x1b7   : > { %443 = vadd.xlane.f32.xlu1 %v442_v54  ;;  %v457_v57 = vmul.f32 %v455_v55, %v991_v0  ;;  %v454_v6 = vmul.f32 %v452_v3, %v450_v5 }
 0x1b8   : > { %v458_v58 = vmul.f32 %v456_v56, %v993_v1  ;;  %v470_v1 = vld [vmem:[#allocation2] sm:$0x1] }
 0x1ba   : > { %v459_v59 = vadd.f32 %v458_v58, %v457_v57 }
 0x1bc   : > { %460 = vadd.xlane.f32.xlu2 %v459_v59 }
 0x22a   : > { %v444_v2 = vpop.xlane.xlu1 %443 }
 0x22b   : > { %v445_v4 = vadd.f32 %v444_v2, %v439_v63 }
 0x22d   : > { %447 = vst.msk [vmem:[#allocation3] sm:$0x1] %vm327_vm1, %v445_v4 }
 0x22f   : > { %v461_v7 = vpop.xlane.xlu2 %460 }
 0x230   : > { %v462_v8 = vadd.f32 %v461_v7, %v454_v6 }
 0x232   : > { %464 = vst.msk [vmem:[#allocation4] sm:$0xff] %vm330_vm4, %v462_v8 }
 0x234   : > { %v725_v0 = vld [vmem:[#allocation3] ss:$0 sm:$0xff] }
 0x235   : > { %v475_v9 = vsel %vm416_vm3, %v470_v1, %v725_v0 }
 0x236   : > { %478 = vst.msk [vmem:[%s322_s24 + $0x8] sm:$0x3] %vm477_vm5, %v475_v9 }
 0x239   : > { %v469_v10 = vld [vmem:[#allocation4] sm:$0xff] }
 0x23a   : > { %476 = vst.msk [vmem:[%s322_s24] sm:$0xff] %vm330_vm4, %v469_v10 }
 0x23b PF: > { %s21_s20 = sadd.s32 1, %s867_s20   ;;  %s1053_s25 = sld [smem:[#allocation14_spill]] }
 0x23c   : > { %p18_p1 = scmp.ge.s32.totalorder %s21_s20, 4   ;;  %s1054_s15 = smov %s851_s16 }
 0x23d   : > { %s1055_s16 = smov %s855_s17  ;;  %s1056_s17 = smov %s965_s8 }
 0x23e   : > { %s1057_s18 = smov %s863_s19  ;;  %20 = sbr.rel (!%p18_p1) target bundleno = 9 (0x9), region = 105 }
 0x241   : > { %s1058_s19 = smov %s1053_s25 }
 0x243   :  { %508 = vsyncpa [#allocation6], 1 }
 0x244   :  { %510 = vsyncpa [#allocation6 + $0x1], 1 }
 0x245   :  { %511 = vsyncpa [#allocation9], 1 }
 0x246   :  { %513 = vsyncpa [#allocation9 + $0x1], 1 }
 0x247   :  { %514 = vsyncpa [#allocation7], 1 }
 0x248   :  { %516 = vsyncpa [#allocation7 + $0x1], 1 }

</bundles_post_ra>
